<compile_context>
chip_gen: v7x
topology: tpu7x:2x2x1
jax: 0.10.0
libtpu: 0.0.40
codegen_flags: <defaults>
</compile_context>

<pallas_src>
import jax
import jax.numpy as jnp
from jax.experimental import pallas as pl
from jax.experimental.pallas import tpu as pltpu

_PARAMS_PER_LAYER = 3  # wih (D_l,3H) | whh (H,3H) | bias slab (2,3H)


def _make_kernel(window_size, batch_tile, in_dim, hid_dim, out_dim, n_layers):
    W, BT, D, H, O = window_size, batch_tile, in_dim, hid_dim, out_dim

    def kernel(x_ref, *refs):
        # refs = [wih_0, whh_0, bias_0, ..., fc_w, fc_b, out_ref, seq_scratch]
        out_ref = refs[-2]
        seq_ref = refs[-1]                                   # (W, BT, H) time-major
        fc_w = refs[n_layers * _PARAMS_PER_LAYER][...]       # (H, O)
        fc_b = refs[n_layers * _PARAMS_PER_LAYER + 1][...]   # (1, O)

        # Time-major flattened input of the current layer: (W*BT, D_l).
        cur = x_ref[...].reshape(W * BT, D)

        for l in range(n_layers):
            base = l * _PARAMS_PER_LAYER
            wih = refs[base + 0][...]            # (D_l, 3H), gate order r|z|n
            whh = refs[base + 1][...]            # (H, 3H)
            bias = refs[base + 2][...]           # (2, 3H)
            gi_bias = bias[0:1, :]               # [b_ir+b_hr | b_iz+b_hz | b_in]
            # bh_n broadcast hoisted once per layer (not per timestep).
            bh_n = jnp.broadcast_to(bias[1:2, :H], (BT, H))

            # Hoist the input projection for ALL timesteps out of the recurrence:
            # one (W*BT, D_l) x (D_l, 3H) matmul per layer.
            gi_all = (jnp.dot(cur, wih, preferred_element_type=jnp.float32)
                      + gi_bias).reshape(W, BT, 3 * H)

            # Serial recurrence: a single fused (BT,H)x(H,3H) MXU matmul per step.
            h = jnp.zeros((BT, H), jnp.float32)
            for t in range(W):                   # W is small & static -> unroll
                gi_t = gi_all[t]                 # (BT, 3H) full tile, time-major
                gh = jnp.dot(h, whh, preferred_element_type=jnp.float32)
                rz = jax.nn.sigmoid(gi_t[:, :2 * H] + gh[:, :2 * H])
                r = rz[:, :H]
                z = rz[:, H:]
                n = jnp.tanh(gi_t[:, 2 * H:] + r * (gh[:, 2 * H:] + bh_n))
                h = (1.0 - z) * n + z * h
                seq_ref[t] = h                   # full (BT, H) tile store
            cur = seq_ref[...].reshape(W * BT, H)

        # fc head: one matmul over the whole hidden sequence, time-major store.
        out = jnp.dot(cur, fc_w, preferred_element_type=jnp.float32) + fc_b
        out_ref[...] = out.reshape(W, BT, O).astype(out_ref.dtype)

    return kernel


def init_params(key, in_dim, hid_dim, out_dim, n_layers):
    """Deterministic synthetic params (PyTorch-style U(-1/sqrt(H), 1/sqrt(H)))."""
    params = {"n_layers": n_layers, "hid_dim": hid_dim, "out_dim": out_dim}
    k = 1.0 / (hid_dim ** 0.5)
    keys = jax.random.split(key, 4 * n_layers + 2)
    idx = 0
    for l in range(n_layers):
        d_in = in_dim if l == 0 else hid_dim
        wih = jax.random.uniform(keys[idx], (3 * hid_dim, d_in), minval=-k, maxval=k); idx += 1
        whh = jax.random.uniform(keys[idx], (3 * hid_dim, hid_dim), minval=-k, maxval=k); idx += 1
        bih = jax.random.uniform(keys[idx], (3 * hid_dim,), minval=-k, maxval=k); idx += 1
        bhh = jax.random.uniform(keys[idx], (3 * hid_dim,), minval=-k, maxval=k); idx += 1
        params[f"wih_{l}"] = wih.T.astype(jnp.float32)        # (D_l, 3H), gates r,z,n
        params[f"whh_{l}"] = whh.T.astype(jnp.float32)        # (H, 3H)
        params[f"bih_{l}"] = bih.reshape(1, -1).astype(jnp.float32)
        params[f"bhh_{l}"] = bhh.reshape(1, -1).astype(jnp.float32)
    fc_w = jax.random.uniform(keys[idx], (out_dim, hid_dim), minval=-k, maxval=k); idx += 1
    fc_b = jax.random.uniform(keys[idx], (out_dim,), minval=-k, maxval=k)
    params["fc_w"] = fc_w.T.astype(jnp.float32)               # (H, O)
    params["fc_b"] = fc_b.reshape(1, -1).astype(jnp.float32)  # (1, O)
    return params


def reconstruction_forward(x, params, window_size, batch_tile=None):
    """x: (B, in_dim) latent vector. Returns (B, window_size, out_dim), batch-first."""
    B, D = x.shape
    H = params["hid_dim"]
    O = params["out_dim"]
    n_layers = params["n_layers"]
    W = window_size

    # Exact PyTorch semantics: x.repeat_interleave(W, dim=1).view(B, W, -1).
    x_seq = jnp.repeat(x, W, axis=1).reshape(B, W, D)

    # Pad the batch up to a multiple of 8 so every (BT, H) tile is sublane-full.
    B_pad = max(8, ((B + 7) // 8) * 8)
    if B_pad != B:
        x_seq = jnp.concatenate(
            [x_seq, jnp.zeros((B_pad - B, W, D), x_seq.dtype)], axis=0)

    # Time-major layout for the kernel: (W, B_pad, D).
    x_tm = jnp.transpose(x_seq, (1, 0, 2))

    if batch_tile is None:
        batch_tile = B_pad                      # one grid step by default
    assert B_pad % batch_tile == 0
    assert batch_tile == B_pad or batch_tile % 8 == 0
    n_btiles = B_pad // batch_tile

    inputs = [x_tm]
    in_specs = [pl.BlockSpec((W, batch_tile, D), lambda b: (0, b, 0))]

    for l in range(n_layers):
        d_l = D if l == 0 else H
        bih = params[f"bih_{l}"][0]
        bhh = params[f"bhh_{l}"][0]
        gi_bias = jnp.concatenate([bih[:H] + bhh[:H],
                                   bih[H:2 * H] + bhh[H:2 * H],
                                   bih[2 * H:]])                       # (3H,)
        bh_n_row = jnp.concatenate([bhh[2 * H:], jnp.zeros((2 * H,), jnp.float32)])
        bias_slab = jnp.stack([gi_bias, bh_n_row], axis=0)             # (2, 3H)
        inputs += [params[f"wih_{l}"], params[f"whh_{l}"], bias_slab]
        in_specs += [
            pl.BlockSpec((d_l, 3 * H), lambda b: (0, 0)),
            pl.BlockSpec((H, 3 * H), lambda b: (0, 0)),
            pl.BlockSpec((2, 3 * H), lambda b: (0, 0)),
        ]

    inputs += [params["fc_w"], params["fc_b"]]
    in_specs += [pl.BlockSpec((H, O), lambda b: (0, 0)),
                 pl.BlockSpec((1, O), lambda b: (0, 0))]

    kernel = _make_kernel(W, batch_tile, D, H, O, n_layers)

    # NOTE: for production W*B*H set vmem_limit_bytes (esp. v7x's 64 MiB VMEM) and
    # cast weights / seq scratch to bf16 with f32 accumulation.
    out_tm = pl.pallas_call(
        kernel,
        out_shape=jax.ShapeDtypeStruct((W, B_pad, O), jnp.float32),
        grid_spec=pltpu.PrefetchScalarGridSpec(
            num_scalar_prefetch=0,
            grid=(n_btiles,),
            in_specs=in_specs,
            out_specs=pl.BlockSpec((W, batch_tile, O), lambda b: (0, b, 0)),
            scratch_shapes=[pltpu.VMEM((W, batch_tile, H), jnp.float32)],
        ),
        compiler_params=pltpu.CompilerParams(dimension_semantics=("parallel",)),
    )(*inputs)

    # Tiny layout-only transpose back to batch-first; drop padded batch rows.
    return jnp.transpose(out_tm, (1, 0, 2))[:B]


def reconstruction_ref(x, params, window_size):
    """Pure-JAX reference (PyTorch GRU semantics: gates r,z,n; h0=0; repeat_interleave)."""
    B, D = x.shape
    H = params["hid_dim"]
    n_layers = params["n_layers"]
    inp = jnp.repeat(x, window_size, axis=1).reshape(B, window_size, D)
    for l in range(n_layers):
        wih, whh = params[f"wih_{l}"], params[f"whh_{l}"]
        bih, bhh = params[f"bih_{l}"][0], params[f"bhh_{l}"][0]
        h = jnp.zeros((B, H), jnp.float32)
        outs = []
        for t in range(window_size):
            x_t = inp[:, t, :]
            gi = x_t @ wih + bih
            gh = h @ whh + bhh
            r = jax.nn.sigmoid(gi[:, :H] + gh[:, :H])
            z = jax.nn.sigmoid(gi[:, H:2 * H] + gh[:, H:2 * H])
            n = jnp.tanh(gi[:, 2 * H:] + r * gh[:, 2 * H:])
            h = (1.0 - z) * n + z * h
            outs.append(h)
        inp = jnp.stack(outs, axis=1)
    return inp @ params["fc_w"] + params["fc_b"][0]


if __name__ == "__main__":
    window_size = 8
    in_dim = 4
    hid_dim = 32
    out_dim = 4
    n_layers = 2
    batch = 2

    key = jax.random.PRNGKey(0)
    kx, kp = jax.random.split(key)
    x = jax.random.normal(kx, (batch, in_dim), dtype=jnp.float32)
    params = init_params(kp, in_dim, hid_dim, out_dim, n_layers)

    out = reconstruction_forward(x, params, window_size)   # single grid step, BT=8
    out = jax.block_until_ready(out)

    ref = reconstruction_ref(x, params, window_size)
    assert out.shape == (batch, window_size, out_dim), out.shape
    assert jnp.allclose(out, ref, atol=1e-4, rtol=1e-4), "mismatch vs JAX reference"

    print("KERNEL_OK")
</pallas_src>

<mosaic_0001>
module attributes {stable_mosaic.version = 11 : i64} {
  func.func @kernel(%arg0: i32, %arg1: memref<8x8x4xf32, #tpu.memory_space<vmem>>, %arg2: memref<4x96xf32, #tpu.memory_space<vmem>>, %arg3: memref<32x96xf32, #tpu.memory_space<vmem>>, %arg4: memref<2x96xf32, #tpu.memory_space<vmem>>, %arg5: memref<32x96xf32, #tpu.memory_space<vmem>>, %arg6: memref<32x96xf32, #tpu.memory_space<vmem>>, %arg7: memref<2x96xf32, #tpu.memory_space<vmem>>, %arg8: memref<32x4xf32, #tpu.memory_space<vmem>>, %arg9: memref<1x4xf32, #tpu.memory_space<vmem>>, %arg10: memref<8x8x4xf32, #tpu.memory_space<vmem>>, %arg11: memref<8x8x32xf32, #tpu.memory_space<vmem>>) attributes {dimension_semantics = [#tpu.dimension_semantics<parallel>], iteration_bounds = array<i64: 1>, scalar_prefetch = 0 : i64, scratch_operands = 1 : i64, tpu.core_type = #tpu.core_type<tc>, window_params = [{transform_indices = @transform_0, window_bounds = array<i64: 8, 8, 4>}, {pipeline_mode = #tpu.pipeline_mode<synchronous>, transform_indices = @transform_1, window_bounds = array<i64: 4, 96>}, {pipeline_mode = #tpu.pipeline_mode<synchronous>, transform_indices = @transform_2, window_bounds = array<i64: 32, 96>}, {pipeline_mode = #tpu.pipeline_mode<synchronous>, transform_indices = @transform_3, window_bounds = array<i64: 2, 96>}, {pipeline_mode = #tpu.pipeline_mode<synchronous>, transform_indices = @transform_4, window_bounds = array<i64: 32, 96>}, {pipeline_mode = #tpu.pipeline_mode<synchronous>, transform_indices = @transform_5, window_bounds = array<i64: 32, 96>}, {pipeline_mode = #tpu.pipeline_mode<synchronous>, transform_indices = @transform_6, window_bounds = array<i64: 2, 96>}, {pipeline_mode = #tpu.pipeline_mode<synchronous>, transform_indices = @transform_7, window_bounds = array<i64: 32, 4>}, {pipeline_mode = #tpu.pipeline_mode<synchronous>, transform_indices = @transform_8, window_bounds = array<i64: 1, 4>}, {transform_indices = @transform_9, window_bounds = array<i64: 8, 8, 4>}]} {
    %c0 = arith.constant 0 : index
    %c0_0 = arith.constant 0 : index
    %0 = vector.load %arg8[%c0, %c0_0] : memref<32x4xf32, #tpu.memory_space<vmem>>, vector<32x4xf32>
    %c0_1 = arith.constant 0 : index
    %c0_2 = arith.constant 0 : index
    %1 = vector.load %arg9[%c0_1, %c0_2] : memref<1x4xf32, #tpu.memory_space<vmem>>, vector<1x4xf32>
    %c0_3 = arith.constant 0 : index
    %c0_4 = arith.constant 0 : index
    %c0_5 = arith.constant 0 : index
    %2 = vector.load %arg1[%c0_3, %c0_4, %c0_5] : memref<8x8x4xf32, #tpu.memory_space<vmem>>, vector<8x8x4xf32>
    %3 = vector.shape_cast %2 : vector<8x8x4xf32> to vector<64x4xf32>
    %c0_6 = arith.constant 0 : index
    %c0_7 = arith.constant 0 : index
    %4 = vector.load %arg2[%c0_6, %c0_7] : memref<4x96xf32, #tpu.memory_space<vmem>>, vector<4x96xf32>
    %c0_8 = arith.constant 0 : index
    %c0_9 = arith.constant 0 : index
    %5 = vector.load %arg3[%c0_8, %c0_9] : memref<32x96xf32, #tpu.memory_space<vmem>>, vector<32x96xf32>
    %c0_10 = arith.constant 0 : index
    %c0_11 = arith.constant 0 : index
    %6 = vector.load %arg4[%c0_10, %c0_11] : memref<2x96xf32, #tpu.memory_space<vmem>>, vector<2x96xf32>
    %7 = vector.extract_strided_slice %6 {offsets = [0, 0], sizes = [1, 96], strides = [1, 1]} : vector<2x96xf32> to vector<1x96xf32>
    %8 = vector.extract_strided_slice %6 {offsets = [1, 0], sizes = [1, 32], strides = [1, 1]} : vector<2x96xf32> to vector<1x32xf32>
    %9 = vector.shape_cast %8 : vector<1x32xf32> to vector<1x32xf32>
    %10 = vector.broadcast %9 : vector<1x32xf32> to vector<8x32xf32>
    %cst = arith.constant dense<0.000000e+00> : vector<64x96xf32>
    %11 = tpu.matmul %3, %4, %cst {dimension_numbers = #tpu.dot_dimension_numbers<[1], [0], [0], [1], [0, 0, 1, 1], [], []>} : vector<64x4xf32>, vector<4x96xf32>, vector<64x96xf32> -> vector<64x96xf32>
    %12 = vector.broadcast %7 : vector<1x96xf32> to vector<64x96xf32>
    %13 = arith.addf %11, %12 : vector<64x96xf32>
    %14 = vector.shape_cast %13 : vector<64x96xf32> to vector<8x8x96xf32>
    %cst_12 = arith.constant 0.000000e+00 : f32
    %15 = vector.broadcast %cst_12 : f32 to vector<8x32xf32>
    %16 = vector.extract_strided_slice %14 {offsets = [0, 0, 0], sizes = [1, 8, 96], strides = [1, 1, 1]} : vector<8x8x96xf32> to vector<1x8x96xf32>
    %17 = vector.shape_cast %16 : vector<1x8x96xf32> to vector<8x96xf32>
    %cst_13 = arith.constant dense<0.000000e+00> : vector<8x96xf32>
    %18 = tpu.matmul %15, %5, %cst_13 {dimension_numbers = #tpu.dot_dimension_numbers<[1], [0], [0], [1], [0, 0, 1, 1], [], []>} : vector<8x32xf32>, vector<32x96xf32>, vector<8x96xf32> -> vector<8x96xf32>
    %19 = vector.extract_strided_slice %17 {offsets = [0, 0], sizes = [8, 64], strides = [1, 1]} : vector<8x96xf32> to vector<8x64xf32>
    %20 = vector.extract_strided_slice %18 {offsets = [0, 0], sizes = [8, 64], strides = [1, 1]} : vector<8x96xf32> to vector<8x64xf32>
    %21 = arith.addf %19, %20 : vector<8x64xf32>
    %22 = arith.negf %21 : vector<8x64xf32>
    %23 = math.exp %22 : vector<8x64xf32>
    %cst_14 = arith.constant 1.000000e+00 : f32
    %24 = vector.broadcast %cst_14 : f32 to vector<8x64xf32>
    %25 = arith.addf %24, %23 : vector<8x64xf32>
    %26 = arith.divf %24, %25 : vector<8x64xf32>
    %27 = vector.extract_strided_slice %26 {offsets = [0, 0], sizes = [8, 32], strides = [1, 1]} : vector<8x64xf32> to vector<8x32xf32>
    %28 = vector.extract_strided_slice %26 {offsets = [0, 32], sizes = [8, 32], strides = [1, 1]} : vector<8x64xf32> to vector<8x32xf32>
    %29 = vector.extract_strided_slice %17 {offsets = [0, 64], sizes = [8, 32], strides = [1, 1]} : vector<8x96xf32> to vector<8x32xf32>
    %30 = vector.extract_strided_slice %18 {offsets = [0, 64], sizes = [8, 32], strides = [1, 1]} : vector<8x96xf32> to vector<8x32xf32>
    %31 = arith.addf %30, %10 : vector<8x32xf32>
    %32 = arith.mulf %27, %31 : vector<8x32xf32>
    %33 = arith.addf %29, %32 : vector<8x32xf32>
    %34 = math.tanh %33 : vector<8x32xf32>
    %cst_15 = arith.constant 1.000000e+00 : f32
    %35 = vector.broadcast %cst_15 : f32 to vector<8x32xf32>
    %36 = arith.subf %35, %28 : vector<8x32xf32>
    %37 = arith.mulf %36, %34 : vector<8x32xf32>
    %38 = arith.mulf %28, %15 : vector<8x32xf32>
    %39 = arith.addf %37, %38 : vector<8x32xf32>
    %c0_16 = arith.constant 0 : index
    %c0_17 = arith.constant 0 : index
    %c0_18 = arith.constant 0 : index
    %40 = vector.load %arg11[%c0_16, %c0_17, %c0_18] : memref<8x8x32xf32, #tpu.memory_space<vmem>>, vector<1x8x32xf32>
    %41 = vector.shape_cast %40 : vector<1x8x32xf32> to vector<8x32xf32>
    %42 = vector.shape_cast %39 : vector<8x32xf32> to vector<1x8x32xf32>
    tpu.vector_store %arg11[%c0_16, %c0_17, %c0_18], %42 {strides = array<i32>} : memref<8x8x32xf32, #tpu.memory_space<vmem>>, vector<1x8x32xf32>,
    %43 = vector.extract_strided_slice %14 {offsets = [1, 0, 0], sizes = [1, 8, 96], strides = [1, 1, 1]} : vector<8x8x96xf32> to vector<1x8x96xf32>
    %44 = vector.shape_cast %43 : vector<1x8x96xf32> to vector<8x96xf32>
    %cst_19 = arith.constant dense<0.000000e+00> : vector<8x96xf32>
    %45 = tpu.matmul %39, %5, %cst_19 {dimension_numbers = #tpu.dot_dimension_numbers<[1], [0], [0], [1], [0, 0, 1, 1], [], []>} : vector<8x32xf32>, vector<32x96xf32>, vector<8x96xf32> -> vector<8x96xf32>
    %46 = vector.extract_strided_slice %44 {offsets = [0, 0], sizes = [8, 64], strides = [1, 1]} : vector<8x96xf32> to vector<8x64xf32>
    %47 = vector.extract_strided_slice %45 {offsets = [0, 0], sizes = [8, 64], strides = [1, 1]} : vector<8x96xf32> to vector<8x64xf32>
    %48 = arith.addf %46, %47 : vector<8x64xf32>
    %49 = arith.negf %48 : vector<8x64xf32>
    %50 = math.exp %49 : vector<8x64xf32>
    %cst_20 = arith.constant 1.000000e+00 : f32
    %51 = vector.broadcast %cst_20 : f32 to vector<8x64xf32>
    %52 = arith.addf %51, %50 : vector<8x64xf32>
    %53 = arith.divf %51, %52 : vector<8x64xf32>
    %54 = vector.extract_strided_slice %53 {offsets = [0, 0], sizes = [8, 32], strides = [1, 1]} : vector<8x64xf32> to vector<8x32xf32>
    %55 = vector.extract_strided_slice %53 {offsets = [0, 32], sizes = [8, 32], strides = [1, 1]} : vector<8x64xf32> to vector<8x32xf32>
    %56 = vector.extract_strided_slice %44 {offsets = [0, 64], sizes = [8, 32], strides = [1, 1]} : vector<8x96xf32> to vector<8x32xf32>
    %57 = vector.extract_strided_slice %45 {offsets = [0, 64], sizes = [8, 32], strides = [1, 1]} : vector<8x96xf32> to vector<8x32xf32>
    %58 = arith.addf %57, %10 : vector<8x32xf32>
    %59 = arith.mulf %54, %58 : vector<8x32xf32>
    %60 = arith.addf %56, %59 : vector<8x32xf32>
    %61 = math.tanh %60 : vector<8x32xf32>
    %cst_21 = arith.constant 1.000000e+00 : f32
    %62 = vector.broadcast %cst_21 : f32 to vector<8x32xf32>
    %63 = arith.subf %62, %55 : vector<8x32xf32>
    %64 = arith.mulf %63, %61 : vector<8x32xf32>
    %65 = arith.mulf %55, %39 : vector<8x32xf32>
    %66 = arith.addf %64, %65 : vector<8x32xf32>
    %c1 = arith.constant 1 : index
    %c0_22 = arith.constant 0 : index
    %c0_23 = arith.constant 0 : index
    %67 = vector.load %arg11[%c1, %c0_22, %c0_23] : memref<8x8x32xf32, #tpu.memory_space<vmem>>, vector<1x8x32xf32>
    %68 = vector.shape_cast %67 : vector<1x8x32xf32> to vector<8x32xf32>
    %69 = vector.shape_cast %66 : vector<8x32xf32> to vector<1x8x32xf32>
    tpu.vector_store %arg11[%c1, %c0_22, %c0_23], %69 {strides = array<i32>} : memref<8x8x32xf32, #tpu.memory_space<vmem>>, vector<1x8x32xf32>,
    %70 = vector.extract_strided_slice %14 {offsets = [2, 0, 0], sizes = [1, 8, 96], strides = [1, 1, 1]} : vector<8x8x96xf32> to vector<1x8x96xf32>
    %71 = vector.shape_cast %70 : vector<1x8x96xf32> to vector<8x96xf32>
    %cst_24 = arith.constant dense<0.000000e+00> : vector<8x96xf32>
    %72 = tpu.matmul %66, %5, %cst_24 {dimension_numbers = #tpu.dot_dimension_numbers<[1], [0], [0], [1], [0, 0, 1, 1], [], []>} : vector<8x32xf32>, vector<32x96xf32>, vector<8x96xf32> -> vector<8x96xf32>
    %73 = vector.extract_strided_slice %71 {offsets = [0, 0], sizes = [8, 64], strides = [1, 1]} : vector<8x96xf32> to vector<8x64xf32>
    %74 = vector.extract_strided_slice %72 {offsets = [0, 0], sizes = [8, 64], strides = [1, 1]} : vector<8x96xf32> to vector<8x64xf32>
    %75 = arith.addf %73, %74 : vector<8x64xf32>
    %76 = arith.negf %75 : vector<8x64xf32>
    %77 = math.exp %76 : vector<8x64xf32>
    %cst_25 = arith.constant 1.000000e+00 : f32
    %78 = vector.broadcast %cst_25 : f32 to vector<8x64xf32>
    %79 = arith.addf %78, %77 : vector<8x64xf32>
    %80 = arith.divf %78, %79 : vector<8x64xf32>
    %81 = vector.extract_strided_slice %80 {offsets = [0, 0], sizes = [8, 32], strides = [1, 1]} : vector<8x64xf32> to vector<8x32xf32>
    %82 = vector.extract_strided_slice %80 {offsets = [0, 32], sizes = [8, 32], strides = [1, 1]} : vector<8x64xf32> to vector<8x32xf32>
    %83 = vector.extract_strided_slice %71 {offsets = [0, 64], sizes = [8, 32], strides = [1, 1]} : vector<8x96xf32> to vector<8x32xf32>
    %84 = vector.extract_strided_slice %72 {offsets = [0, 64], sizes = [8, 32], strides = [1, 1]} : vector<8x96xf32> to vector<8x32xf32>
    %85 = arith.addf %84, %10 : vector<8x32xf32>
    %86 = arith.mulf %81, %85 : vector<8x32xf32>
    %87 = arith.addf %83, %86 : vector<8x32xf32>
    %88 = math.tanh %87 : vector<8x32xf32>
    %cst_26 = arith.constant 1.000000e+00 : f32
    %89 = vector.broadcast %cst_26 : f32 to vector<8x32xf32>
    %90 = arith.subf %89, %82 : vector<8x32xf32>
    %91 = arith.mulf %90, %88 : vector<8x32xf32>
    %92 = arith.mulf %82, %66 : vector<8x32xf32>
    %93 = arith.addf %91, %92 : vector<8x32xf32>
    %c2 = arith.constant 2 : index
    %c0_27 = arith.constant 0 : index
    %c0_28 = arith.constant 0 : index
    %94 = vector.load %arg11[%c2, %c0_27, %c0_28] : memref<8x8x32xf32, #tpu.memory_space<vmem>>, vector<1x8x32xf32>
    %95 = vector.shape_cast %94 : vector<1x8x32xf32> to vector<8x32xf32>
    %96 = vector.shape_cast %93 : vector<8x32xf32> to vector<1x8x32xf32>
    tpu.vector_store %arg11[%c2, %c0_27, %c0_28], %96 {strides = array<i32>} : memref<8x8x32xf32, #tpu.memory_space<vmem>>, vector<1x8x32xf32>,
    %97 = vector.extract_strided_slice %14 {offsets = [3, 0, 0], sizes = [1, 8, 96], strides = [1, 1, 1]} : vector<8x8x96xf32> to vector<1x8x96xf32>
    %98 = vector.shape_cast %97 : vector<1x8x96xf32> to vector<8x96xf32>
    %cst_29 = arith.constant dense<0.000000e+00> : vector<8x96xf32>
    %99 = tpu.matmul %93, %5, %cst_29 {dimension_numbers = #tpu.dot_dimension_numbers<[1], [0], [0], [1], [0, 0, 1, 1], [], []>} : vector<8x32xf32>, vector<32x96xf32>, vector<8x96xf32> -> vector<8x96xf32>
    %100 = vector.extract_strided_slice %98 {offsets = [0, 0], sizes = [8, 64], strides = [1, 1]} : vector<8x96xf32> to vector<8x64xf32>
    %101 = vector.extract_strided_slice %99 {offsets = [0, 0], sizes = [8, 64], strides = [1, 1]} : vector<8x96xf32> to vector<8x64xf32>
    %102 = arith.addf %100, %101 : vector<8x64xf32>
    %103 = arith.negf %102 : vector<8x64xf32>
    %104 = math.exp %103 : vector<8x64xf32>
    %cst_30 = arith.constant 1.000000e+00 : f32
    %105 = vector.broadcast %cst_30 : f32 to vector<8x64xf32>
    %106 = arith.addf %105, %104 : vector<8x64xf32>
    %107 = arith.divf %105, %106 : vector<8x64xf32>
    %108 = vector.extract_strided_slice %107 {offsets = [0, 0], sizes = [8, 32], strides = [1, 1]} : vector<8x64xf32> to vector<8x32xf32>
    %109 = vector.extract_strided_slice %107 {offsets = [0, 32], sizes = [8, 32], strides = [1, 1]} : vector<8x64xf32> to vector<8x32xf32>
    %110 = vector.extract_strided_slice %98 {offsets = [0, 64], sizes = [8, 32], strides = [1, 1]} : vector<8x96xf32> to vector<8x32xf32>
    %111 = vector.extract_strided_slice %99 {offsets = [0, 64], sizes = [8, 32], strides = [1, 1]} : vector<8x96xf32> to vector<8x32xf32>
    %112 = arith.addf %111, %10 : vector<8x32xf32>
    %113 = arith.mulf %108, %112 : vector<8x32xf32>
    %114 = arith.addf %110, %113 : vector<8x32xf32>
    %115 = math.tanh %114 : vector<8x32xf32>
    %cst_31 = arith.constant 1.000000e+00 : f32
    %116 = vector.broadcast %cst_31 : f32 to vector<8x32xf32>
    %117 = arith.subf %116, %109 : vector<8x32xf32>
    %118 = arith.mulf %117, %115 : vector<8x32xf32>
    %119 = arith.mulf %109, %93 : vector<8x32xf32>
    %120 = arith.addf %118, %119 : vector<8x32xf32>
    %c3 = arith.constant 3 : index
    %c0_32 = arith.constant 0 : index
    %c0_33 = arith.constant 0 : index
    %121 = vector.load %arg11[%c3, %c0_32, %c0_33] : memref<8x8x32xf32, #tpu.memory_space<vmem>>, vector<1x8x32xf32>
    %122 = vector.shape_cast %121 : vector<1x8x32xf32> to vector<8x32xf32>
    %123 = vector.shape_cast %120 : vector<8x32xf32> to vector<1x8x32xf32>
    tpu.vector_store %arg11[%c3, %c0_32, %c0_33], %123 {strides = array<i32>} : memref<8x8x32xf32, #tpu.memory_space<vmem>>, vector<1x8x32xf32>,
    %124 = vector.extract_strided_slice %14 {offsets = [4, 0, 0], sizes = [1, 8, 96], strides = [1, 1, 1]} : vector<8x8x96xf32> to vector<1x8x96xf32>
    %125 = vector.shape_cast %124 : vector<1x8x96xf32> to vector<8x96xf32>
    %cst_34 = arith.constant dense<0.000000e+00> : vector<8x96xf32>
    %126 = tpu.matmul %120, %5, %cst_34 {dimension_numbers = #tpu.dot_dimension_numbers<[1], [0], [0], [1], [0, 0, 1, 1], [], []>} : vector<8x32xf32>, vector<32x96xf32>, vector<8x96xf32> -> vector<8x96xf32>
    %127 = vector.extract_strided_slice %125 {offsets = [0, 0], sizes = [8, 64], strides = [1, 1]} : vector<8x96xf32> to vector<8x64xf32>
    %128 = vector.extract_strided_slice %126 {offsets = [0, 0], sizes = [8, 64], strides = [1, 1]} : vector<8x96xf32> to vector<8x64xf32>
    %129 = arith.addf %127, %128 : vector<8x64xf32>
    %130 = arith.negf %129 : vector<8x64xf32>
    %131 = math.exp %130 : vector<8x64xf32>
    %cst_35 = arith.constant 1.000000e+00 : f32
    %132 = vector.broadcast %cst_35 : f32 to vector<8x64xf32>
    %133 = arith.addf %132, %131 : vector<8x64xf32>
    %134 = arith.divf %132, %133 : vector<8x64xf32>
    %135 = vector.extract_strided_slice %134 {offsets = [0, 0], sizes = [8, 32], strides = [1, 1]} : vector<8x64xf32> to vector<8x32xf32>
    %136 = vector.extract_strided_slice %134 {offsets = [0, 32], sizes = [8, 32], strides = [1, 1]} : vector<8x64xf32> to vector<8x32xf32>
    %137 = vector.extract_strided_slice %125 {offsets = [0, 64], sizes = [8, 32], strides = [1, 1]} : vector<8x96xf32> to vector<8x32xf32>
    %138 = vector.extract_strided_slice %126 {offsets = [0, 64], sizes = [8, 32], strides = [1, 1]} : vector<8x96xf32> to vector<8x32xf32>
    %139 = arith.addf %138, %10 : vector<8x32xf32>
    %140 = arith.mulf %135, %139 : vector<8x32xf32>
    %141 = arith.addf %137, %140 : vector<8x32xf32>
    %142 = math.tanh %141 : vector<8x32xf32>
    %cst_36 = arith.constant 1.000000e+00 : f32
    %143 = vector.broadcast %cst_36 : f32 to vector<8x32xf32>
    %144 = arith.subf %143, %136 : vector<8x32xf32>
    %145 = arith.mulf %144, %142 : vector<8x32xf32>
    %146 = arith.mulf %136, %120 : vector<8x32xf32>
    %147 = arith.addf %145, %146 : vector<8x32xf32>
    %c4 = arith.constant 4 : index
    %c0_37 = arith.constant 0 : index
    %c0_38 = arith.constant 0 : index
    %148 = vector.load %arg11[%c4, %c0_37, %c0_38] : memref<8x8x32xf32, #tpu.memory_space<vmem>>, vector<1x8x32xf32>
    %149 = vector.shape_cast %148 : vector<1x8x32xf32> to vector<8x32xf32>
    %150 = vector.shape_cast %147 : vector<8x32xf32> to vector<1x8x32xf32>
    tpu.vector_store %arg11[%c4, %c0_37, %c0_38], %150 {strides = array<i32>} : memref<8x8x32xf32, #tpu.memory_space<vmem>>, vector<1x8x32xf32>,
    %151 = vector.extract_strided_slice %14 {offsets = [5, 0, 0], sizes = [1, 8, 96], strides = [1, 1, 1]} : vector<8x8x96xf32> to vector<1x8x96xf32>
    %152 = vector.shape_cast %151 : vector<1x8x96xf32> to vector<8x96xf32>
    %cst_39 = arith.constant dense<0.000000e+00> : vector<8x96xf32>
    %153 = tpu.matmul %147, %5, %cst_39 {dimension_numbers = #tpu.dot_dimension_numbers<[1], [0], [0], [1], [0, 0, 1, 1], [], []>} : vector<8x32xf32>, vector<32x96xf32>, vector<8x96xf32> -> vector<8x96xf32>
    %154 = vector.extract_strided_slice %152 {offsets = [0, 0], sizes = [8, 64], strides = [1, 1]} : vector<8x96xf32> to vector<8x64xf32>
    %155 = vector.extract_strided_slice %153 {offsets = [0, 0], sizes = [8, 64], strides = [1, 1]} : vector<8x96xf32> to vector<8x64xf32>
    %156 = arith.addf %154, %155 : vector<8x64xf32>
    %157 = arith.negf %156 : vector<8x64xf32>
    %158 = math.exp %157 : vector<8x64xf32>
    %cst_40 = arith.constant 1.000000e+00 : f32
    %159 = vector.broadcast %cst_40 : f32 to vector<8x64xf32>
    %160 = arith.addf %159, %158 : vector<8x64xf32>
    %161 = arith.divf %159, %160 : vector<8x64xf32>
    %162 = vector.extract_strided_slice %161 {offsets = [0, 0], sizes = [8, 32], strides = [1, 1]} : vector<8x64xf32> to vector<8x32xf32>
    %163 = vector.extract_strided_slice %161 {offsets = [0, 32], sizes = [8, 32], strides = [1, 1]} : vector<8x64xf32> to vector<8x32xf32>
    %164 = vector.extract_strided_slice %152 {offsets = [0, 64], sizes = [8, 32], strides = [1, 1]} : vector<8x96xf32> to vector<8x32xf32>
    %165 = vector.extract_strided_slice %153 {offsets = [0, 64], sizes = [8, 32], strides = [1, 1]} : vector<8x96xf32> to vector<8x32xf32>
    %166 = arith.addf %165, %10 : vector<8x32xf32>
    %167 = arith.mulf %162, %166 : vector<8x32xf32>
    %168 = arith.addf %164, %167 : vector<8x32xf32>
    %169 = math.tanh %168 : vector<8x32xf32>
    %cst_41 = arith.constant 1.000000e+00 : f32
    %170 = vector.broadcast %cst_41 : f32 to vector<8x32xf32>
    %171 = arith.subf %170, %163 : vector<8x32xf32>
    %172 = arith.mulf %171, %169 : vector<8x32xf32>
    %173 = arith.mulf %163, %147 : vector<8x32xf32>
    %174 = arith.addf %172, %173 : vector<8x32xf32>
    %c5 = arith.constant 5 : index
    %c0_42 = arith.constant 0 : index
    %c0_43 = arith.constant 0 : index
    %175 = vector.load %arg11[%c5, %c0_42, %c0_43] : memref<8x8x32xf32, #tpu.memory_space<vmem>>, vector<1x8x32xf32>
    %176 = vector.shape_cast %175 : vector<1x8x32xf32> to vector<8x32xf32>
    %177 = vector.shape_cast %174 : vector<8x32xf32> to vector<1x8x32xf32>
    tpu.vector_store %arg11[%c5, %c0_42, %c0_43], %177 {strides = array<i32>} : memref<8x8x32xf32, #tpu.memory_space<vmem>>, vector<1x8x32xf32>,
    %178 = vector.extract_strided_slice %14 {offsets = [6, 0, 0], sizes = [1, 8, 96], strides = [1, 1, 1]} : vector<8x8x96xf32> to vector<1x8x96xf32>
    %179 = vector.shape_cast %178 : vector<1x8x96xf32> to vector<8x96xf32>
    %cst_44 = arith.constant dense<0.000000e+00> : vector<8x96xf32>
    %180 = tpu.matmul %174, %5, %cst_44 {dimension_numbers = #tpu.dot_dimension_numbers<[1], [0], [0], [1], [0, 0, 1, 1], [], []>} : vector<8x32xf32>, vector<32x96xf32>, vector<8x96xf32> -> vector<8x96xf32>
    %181 = vector.extract_strided_slice %179 {offsets = [0, 0], sizes = [8, 64], strides = [1, 1]} : vector<8x96xf32> to vector<8x64xf32>
    %182 = vector.extract_strided_slice %180 {offsets = [0, 0], sizes = [8, 64], strides = [1, 1]} : vector<8x96xf32> to vector<8x64xf32>
    %183 = arith.addf %181, %182 : vector<8x64xf32>
    %184 = arith.negf %183 : vector<8x64xf32>
    %185 = math.exp %184 : vector<8x64xf32>
    %cst_45 = arith.constant 1.000000e+00 : f32
    %186 = vector.broadcast %cst_45 : f32 to vector<8x64xf32>
    %187 = arith.addf %186, %185 : vector<8x64xf32>
    %188 = arith.divf %186, %187 : vector<8x64xf32>
    %189 = vector.extract_strided_slice %188 {offsets = [0, 0], sizes = [8, 32], strides = [1, 1]} : vector<8x64xf32> to vector<8x32xf32>
    %190 = vector.extract_strided_slice %188 {offsets = [0, 32], sizes = [8, 32], strides = [1, 1]} : vector<8x64xf32> to vector<8x32xf32>
    %191 = vector.extract_strided_slice %179 {offsets = [0, 64], sizes = [8, 32], strides = [1, 1]} : vector<8x96xf32> to vector<8x32xf32>
    %192 = vector.extract_strided_slice %180 {offsets = [0, 64], sizes = [8, 32], strides = [1, 1]} : vector<8x96xf32> to vector<8x32xf32>
    %193 = arith.addf %192, %10 : vector<8x32xf32>
    %194 = arith.mulf %189, %193 : vector<8x32xf32>
    %195 = arith.addf %191, %194 : vector<8x32xf32>
    %196 = math.tanh %195 : vector<8x32xf32>
    %cst_46 = arith.constant 1.000000e+00 : f32
    %197 = vector.broadcast %cst_46 : f32 to vector<8x32xf32>
    %198 = arith.subf %197, %190 : vector<8x32xf32>
    %199 = arith.mulf %198, %196 : vector<8x32xf32>
    %200 = arith.mulf %190, %174 : vector<8x32xf32>
    %201 = arith.addf %199, %200 : vector<8x32xf32>
    %c6 = arith.constant 6 : index
    %c0_47 = arith.constant 0 : index
    %c0_48 = arith.constant 0 : index
    %202 = vector.load %arg11[%c6, %c0_47, %c0_48] : memref<8x8x32xf32, #tpu.memory_space<vmem>>, vector<1x8x32xf32>
    %203 = vector.shape_cast %202 : vector<1x8x32xf32> to vector<8x32xf32>
    %204 = vector.shape_cast %201 : vector<8x32xf32> to vector<1x8x32xf32>
    tpu.vector_store %arg11[%c6, %c0_47, %c0_48], %204 {strides = array<i32>} : memref<8x8x32xf32, #tpu.memory_space<vmem>>, vector<1x8x32xf32>,
    %205 = vector.extract_strided_slice %14 {offsets = [7, 0, 0], sizes = [1, 8, 96], strides = [1, 1, 1]} : vector<8x8x96xf32> to vector<1x8x96xf32>
    %206 = vector.shape_cast %205 : vector<1x8x96xf32> to vector<8x96xf32>
    %cst_49 = arith.constant dense<0.000000e+00> : vector<8x96xf32>
    %207 = tpu.matmul %201, %5, %cst_49 {dimension_numbers = #tpu.dot_dimension_numbers<[1], [0], [0], [1], [0, 0, 1, 1], [], []>} : vector<8x32xf32>, vector<32x96xf32>, vector<8x96xf32> -> vector<8x96xf32>
    %208 = vector.extract_strided_slice %206 {offsets = [0, 0], sizes = [8, 64], strides = [1, 1]} : vector<8x96xf32> to vector<8x64xf32>
    %209 = vector.extract_strided_slice %207 {offsets = [0, 0], sizes = [8, 64], strides = [1, 1]} : vector<8x96xf32> to vector<8x64xf32>
    %210 = arith.addf %208, %209 : vector<8x64xf32>
    %211 = arith.negf %210 : vector<8x64xf32>
    %212 = math.exp %211 : vector<8x64xf32>
    %cst_50 = arith.constant 1.000000e+00 : f32
    %213 = vector.broadcast %cst_50 : f32 to vector<8x64xf32>
    %214 = arith.addf %213, %212 : vector<8x64xf32>
    %215 = arith.divf %213, %214 : vector<8x64xf32>
    %216 = vector.extract_strided_slice %215 {offsets = [0, 0], sizes = [8, 32], strides = [1, 1]} : vector<8x64xf32> to vector<8x32xf32>
    %217 = vector.extract_strided_slice %215 {offsets = [0, 32], sizes = [8, 32], strides = [1, 1]} : vector<8x64xf32> to vector<8x32xf32>
    %218 = vector.extract_strided_slice %206 {offsets = [0, 64], sizes = [8, 32], strides = [1, 1]} : vector<8x96xf32> to vector<8x32xf32>
    %219 = vector.extract_strided_slice %207 {offsets = [0, 64], sizes = [8, 32], strides = [1, 1]} : vector<8x96xf32> to vector<8x32xf32>
    %220 = arith.addf %219, %10 : vector<8x32xf32>
    %221 = arith.mulf %216, %220 : vector<8x32xf32>
    %222 = arith.addf %218, %221 : vector<8x32xf32>
    %223 = math.tanh %222 : vector<8x32xf32>
    %cst_51 = arith.constant 1.000000e+00 : f32
    %224 = vector.broadcast %cst_51 : f32 to vector<8x32xf32>
    %225 = arith.subf %224, %217 : vector<8x32xf32>
    %226 = arith.mulf %225, %223 : vector<8x32xf32>
    %227 = arith.mulf %217, %201 : vector<8x32xf32>
    %228 = arith.addf %226, %227 : vector<8x32xf32>
    %c7 = arith.constant 7 : index
    %c0_52 = arith.constant 0 : index
    %c0_53 = arith.constant 0 : index
    %229 = vector.load %arg11[%c7, %c0_52, %c0_53] : memref<8x8x32xf32, #tpu.memory_space<vmem>>, vector<1x8x32xf32>
    %230 = vector.shape_cast %229 : vector<1x8x32xf32> to vector<8x32xf32>
    %231 = vector.shape_cast %228 : vector<8x32xf32> to vector<1x8x32xf32>
    tpu.vector_store %arg11[%c7, %c0_52, %c0_53], %231 {strides = array<i32>} : memref<8x8x32xf32, #tpu.memory_space<vmem>>, vector<1x8x32xf32>,
    %c0_54 = arith.constant 0 : index
    %c0_55 = arith.constant 0 : index
    %c0_56 = arith.constant 0 : index
    %232 = vector.load %arg11[%c0_54, %c0_55, %c0_56] : memref<8x8x32xf32, #tpu.memory_space<vmem>>, vector<8x8x32xf32>
    %233 = vector.shape_cast %232 : vector<8x8x32xf32> to vector<64x32xf32>
    %c0_57 = arith.constant 0 : index
    %c0_58 = arith.constant 0 : index
    %234 = vector.load %arg5[%c0_57, %c0_58] : memref<32x96xf32, #tpu.memory_space<vmem>>, vector<32x96xf32>
    %c0_59 = arith.constant 0 : index
    %c0_60 = arith.constant 0 : index
    %235 = vector.load %arg6[%c0_59, %c0_60] : memref<32x96xf32, #tpu.memory_space<vmem>>, vector<32x96xf32>
    %c0_61 = arith.constant 0 : index
    %c0_62 = arith.constant 0 : index
    %236 = vector.load %arg7[%c0_61, %c0_62] : memref<2x96xf32, #tpu.memory_space<vmem>>, vector<2x96xf32>
    %237 = vector.extract_strided_slice %236 {offsets = [0, 0], sizes = [1, 96], strides = [1, 1]} : vector<2x96xf32> to vector<1x96xf32>
    %238 = vector.extract_strided_slice %236 {offsets = [1, 0], sizes = [1, 32], strides = [1, 1]} : vector<2x96xf32> to vector<1x32xf32>
    %239 = vector.shape_cast %238 : vector<1x32xf32> to vector<1x32xf32>
    %240 = vector.broadcast %239 : vector<1x32xf32> to vector<8x32xf32>
    %cst_63 = arith.constant dense<0.000000e+00> : vector<64x96xf32>
    %241 = tpu.matmul %233, %234, %cst_63 {dimension_numbers = #tpu.dot_dimension_numbers<[1], [0], [0], [1], [0, 0, 1, 1], [], []>} : vector<64x32xf32>, vector<32x96xf32>, vector<64x96xf32> -> vector<64x96xf32>
    %242 = vector.broadcast %237 : vector<1x96xf32> to vector<64x96xf32>
    %243 = arith.addf %241, %242 : vector<64x96xf32>
    %244 = vector.shape_cast %243 : vector<64x96xf32> to vector<8x8x96xf32>
    %cst_64 = arith.constant 0.000000e+00 : f32
    %245 = vector.broadcast %cst_64 : f32 to vector<8x32xf32>
    %246 = vector.extract_strided_slice %244 {offsets = [0, 0, 0], sizes = [1, 8, 96], strides = [1, 1, 1]} : vector<8x8x96xf32> to vector<1x8x96xf32>
    %247 = vector.shape_cast %246 : vector<1x8x96xf32> to vector<8x96xf32>
    %cst_65 = arith.constant dense<0.000000e+00> : vector<8x96xf32>
    %248 = tpu.matmul %245, %235, %cst_65 {dimension_numbers = #tpu.dot_dimension_numbers<[1], [0], [0], [1], [0, 0, 1, 1], [], []>} : vector<8x32xf32>, vector<32x96xf32>, vector<8x96xf32> -> vector<8x96xf32>
    %249 = vector.extract_strided_slice %247 {offsets = [0, 0], sizes = [8, 64], strides = [1, 1]} : vector<8x96xf32> to vector<8x64xf32>
    %250 = vector.extract_strided_slice %248 {offsets = [0, 0], sizes = [8, 64], strides = [1, 1]} : vector<8x96xf32> to vector<8x64xf32>
    %251 = arith.addf %249, %250 : vector<8x64xf32>
    %252 = arith.negf %251 : vector<8x64xf32>
    %253 = math.exp %252 : vector<8x64xf32>
    %cst_66 = arith.constant 1.000000e+00 : f32
    %254 = vector.broadcast %cst_66 : f32 to vector<8x64xf32>
    %255 = arith.addf %254, %253 : vector<8x64xf32>
    %256 = arith.divf %254, %255 : vector<8x64xf32>
    %257 = vector.extract_strided_slice %256 {offsets = [0, 0], sizes = [8, 32], strides = [1, 1]} : vector<8x64xf32> to vector<8x32xf32>
    %258 = vector.extract_strided_slice %256 {offsets = [0, 32], sizes = [8, 32], strides = [1, 1]} : vector<8x64xf32> to vector<8x32xf32>
    %259 = vector.extract_strided_slice %247 {offsets = [0, 64], sizes = [8, 32], strides = [1, 1]} : vector<8x96xf32> to vector<8x32xf32>
    %260 = vector.extract_strided_slice %248 {offsets = [0, 64], sizes = [8, 32], strides = [1, 1]} : vector<8x96xf32> to vector<8x32xf32>
    %261 = arith.addf %260, %240 : vector<8x32xf32>
    %262 = arith.mulf %257, %261 : vector<8x32xf32>
    %263 = arith.addf %259, %262 : vector<8x32xf32>
    %264 = math.tanh %263 : vector<8x32xf32>
    %cst_67 = arith.constant 1.000000e+00 : f32
    %265 = vector.broadcast %cst_67 : f32 to vector<8x32xf32>
    %266 = arith.subf %265, %258 : vector<8x32xf32>
    %267 = arith.mulf %266, %264 : vector<8x32xf32>
    %268 = arith.mulf %258, %245 : vector<8x32xf32>
    %269 = arith.addf %267, %268 : vector<8x32xf32>
    %c0_68 = arith.constant 0 : index
    %c0_69 = arith.constant 0 : index
    %c0_70 = arith.constant 0 : index
    %270 = vector.load %arg11[%c0_68, %c0_69, %c0_70] : memref<8x8x32xf32, #tpu.memory_space<vmem>>, vector<1x8x32xf32>
    %271 = vector.shape_cast %270 : vector<1x8x32xf32> to vector<8x32xf32>
    %272 = vector.shape_cast %269 : vector<8x32xf32> to vector<1x8x32xf32>
    tpu.vector_store %arg11[%c0_68, %c0_69, %c0_70], %272 {strides = array<i32>} : memref<8x8x32xf32, #tpu.memory_space<vmem>>, vector<1x8x32xf32>,
    %273 = vector.extract_strided_slice %244 {offsets = [1, 0, 0], sizes = [1, 8, 96], strides = [1, 1, 1]} : vector<8x8x96xf32> to vector<1x8x96xf32>
    %274 = vector.shape_cast %273 : vector<1x8x96xf32> to vector<8x96xf32>
    %cst_71 = arith.constant dense<0.000000e+00> : vector<8x96xf32>
    %275 = tpu.matmul %269, %235, %cst_71 {dimension_numbers = #tpu.dot_dimension_numbers<[1], [0], [0], [1], [0, 0, 1, 1], [], []>} : vector<8x32xf32>, vector<32x96xf32>, vector<8x96xf32> -> vector<8x96xf32>
    %276 = vector.extract_strided_slice %274 {offsets = [0, 0], sizes = [8, 64], strides = [1, 1]} : vector<8x96xf32> to vector<8x64xf32>
    %277 = vector.extract_strided_slice %275 {offsets = [0, 0], sizes = [8, 64], strides = [1, 1]} : vector<8x96xf32> to vector<8x64xf32>
    %278 = arith.addf %276, %277 : vector<8x64xf32>
    %279 = arith.negf %278 : vector<8x64xf32>
    %280 = math.exp %279 : vector<8x64xf32>
    %cst_72 = arith.constant 1.000000e+00 : f32
    %281 = vector.broadcast %cst_72 : f32 to vector<8x64xf32>
    %282 = arith.addf %281, %280 : vector<8x64xf32>
    %283 = arith.divf %281, %282 : vector<8x64xf32>
    %284 = vector.extract_strided_slice %283 {offsets = [0, 0], sizes = [8, 32], strides = [1, 1]} : vector<8x64xf32> to vector<8x32xf32>
    %285 = vector.extract_strided_slice %283 {offsets = [0, 32], sizes = [8, 32], strides = [1, 1]} : vector<8x64xf32> to vector<8x32xf32>
    %286 = vector.extract_strided_slice %274 {offsets = [0, 64], sizes = [8, 32], strides = [1, 1]} : vector<8x96xf32> to vector<8x32xf32>
    %287 = vector.extract_strided_slice %275 {offsets = [0, 64], sizes = [8, 32], strides = [1, 1]} : vector<8x96xf32> to vector<8x32xf32>
    %288 = arith.addf %287, %240 : vector<8x32xf32>
    %289 = arith.mulf %284, %288 : vector<8x32xf32>
    %290 = arith.addf %286, %289 : vector<8x32xf32>
    %291 = math.tanh %290 : vector<8x32xf32>
    %cst_73 = arith.constant 1.000000e+00 : f32
    %292 = vector.broadcast %cst_73 : f32 to vector<8x32xf32>
    %293 = arith.subf %292, %285 : vector<8x32xf32>
    %294 = arith.mulf %293, %291 : vector<8x32xf32>
    %295 = arith.mulf %285, %269 : vector<8x32xf32>
    %296 = arith.addf %294, %295 : vector<8x32xf32>
    %c1_74 = arith.constant 1 : index
    %c0_75 = arith.constant 0 : index
    %c0_76 = arith.constant 0 : index
    %297 = vector.load %arg11[%c1_74, %c0_75, %c0_76] : memref<8x8x32xf32, #tpu.memory_space<vmem>>, vector<1x8x32xf32>
    %298 = vector.shape_cast %297 : vector<1x8x32xf32> to vector<8x32xf32>
    %299 = vector.shape_cast %296 : vector<8x32xf32> to vector<1x8x32xf32>
    tpu.vector_store %arg11[%c1_74, %c0_75, %c0_76], %299 {strides = array<i32>} : memref<8x8x32xf32, #tpu.memory_space<vmem>>, vector<1x8x32xf32>,
    %300 = vector.extract_strided_slice %244 {offsets = [2, 0, 0], sizes = [1, 8, 96], strides = [1, 1, 1]} : vector<8x8x96xf32> to vector<1x8x96xf32>
    %301 = vector.shape_cast %300 : vector<1x8x96xf32> to vector<8x96xf32>
    %cst_77 = arith.constant dense<0.000000e+00> : vector<8x96xf32>
    %302 = tpu.matmul %296, %235, %cst_77 {dimension_numbers = #tpu.dot_dimension_numbers<[1], [0], [0], [1], [0, 0, 1, 1], [], []>} : vector<8x32xf32>, vector<32x96xf32>, vector<8x96xf32> -> vector<8x96xf32>
    %303 = vector.extract_strided_slice %301 {offsets = [0, 0], sizes = [8, 64], strides = [1, 1]} : vector<8x96xf32> to vector<8x64xf32>
    %304 = vector.extract_strided_slice %302 {offsets = [0, 0], sizes = [8, 64], strides = [1, 1]} : vector<8x96xf32> to vector<8x64xf32>
    %305 = arith.addf %303, %304 : vector<8x64xf32>
    %306 = arith.negf %305 : vector<8x64xf32>
    %307 = math.exp %306 : vector<8x64xf32>
    %cst_78 = arith.constant 1.000000e+00 : f32
    %308 = vector.broadcast %cst_78 : f32 to vector<8x64xf32>
    %309 = arith.addf %308, %307 : vector<8x64xf32>
    %310 = arith.divf %308, %309 : vector<8x64xf32>
    %311 = vector.extract_strided_slice %310 {offsets = [0, 0], sizes = [8, 32], strides = [1, 1]} : vector<8x64xf32> to vector<8x32xf32>
    %312 = vector.extract_strided_slice %310 {offsets = [0, 32], sizes = [8, 32], strides = [1, 1]} : vector<8x64xf32> to vector<8x32xf32>
    %313 = vector.extract_strided_slice %301 {offsets = [0, 64], sizes = [8, 32], strides = [1, 1]} : vector<8x96xf32> to vector<8x32xf32>
    %314 = vector.extract_strided_slice %302 {offsets = [0, 64], sizes = [8, 32], strides = [1, 1]} : vector<8x96xf32> to vector<8x32xf32>
    %315 = arith.addf %314, %240 : vector<8x32xf32>
    %316 = arith.mulf %311, %315 : vector<8x32xf32>
    %317 = arith.addf %313, %316 : vector<8x32xf32>
    %318 = math.tanh %317 : vector<8x32xf32>
    %cst_79 = arith.constant 1.000000e+00 : f32
    %319 = vector.broadcast %cst_79 : f32 to vector<8x32xf32>
    %320 = arith.subf %319, %312 : vector<8x32xf32>
    %321 = arith.mulf %320, %318 : vector<8x32xf32>
    %322 = arith.mulf %312, %296 : vector<8x32xf32>
    %323 = arith.addf %321, %322 : vector<8x32xf32>
    %c2_80 = arith.constant 2 : index
    %c0_81 = arith.constant 0 : index
    %c0_82 = arith.constant 0 : index
    %324 = vector.load %arg11[%c2_80, %c0_81, %c0_82] : memref<8x8x32xf32, #tpu.memory_space<vmem>>, vector<1x8x32xf32>
    %325 = vector.shape_cast %324 : vector<1x8x32xf32> to vector<8x32xf32>
    %326 = vector.shape_cast %323 : vector<8x32xf32> to vector<1x8x32xf32>
    tpu.vector_store %arg11[%c2_80, %c0_81, %c0_82], %326 {strides = array<i32>} : memref<8x8x32xf32, #tpu.memory_space<vmem>>, vector<1x8x32xf32>,
    %327 = vector.extract_strided_slice %244 {offsets = [3, 0, 0], sizes = [1, 8, 96], strides = [1, 1, 1]} : vector<8x8x96xf32> to vector<1x8x96xf32>
    %328 = vector.shape_cast %327 : vector<1x8x96xf32> to vector<8x96xf32>
    %cst_83 = arith.constant dense<0.000000e+00> : vector<8x96xf32>
    %329 = tpu.matmul %323, %235, %cst_83 {dimension_numbers = #tpu.dot_dimension_numbers<[1], [0], [0], [1], [0, 0, 1, 1], [], []>} : vector<8x32xf32>, vector<32x96xf32>, vector<8x96xf32> -> vector<8x96xf32>
    %330 = vector.extract_strided_slice %328 {offsets = [0, 0], sizes = [8, 64], strides = [1, 1]} : vector<8x96xf32> to vector<8x64xf32>
    %331 = vector.extract_strided_slice %329 {offsets = [0, 0], sizes = [8, 64], strides = [1, 1]} : vector<8x96xf32> to vector<8x64xf32>
    %332 = arith.addf %330, %331 : vector<8x64xf32>
    %333 = arith.negf %332 : vector<8x64xf32>
    %334 = math.exp %333 : vector<8x64xf32>
    %cst_84 = arith.constant 1.000000e+00 : f32
    %335 = vector.broadcast %cst_84 : f32 to vector<8x64xf32>
    %336 = arith.addf %335, %334 : vector<8x64xf32>
    %337 = arith.divf %335, %336 : vector<8x64xf32>
    %338 = vector.extract_strided_slice %337 {offsets = [0, 0], sizes = [8, 32], strides = [1, 1]} : vector<8x64xf32> to vector<8x32xf32>
    %339 = vector.extract_strided_slice %337 {offsets = [0, 32], sizes = [8, 32], strides = [1, 1]} : vector<8x64xf32> to vector<8x32xf32>
    %340 = vector.extract_strided_slice %328 {offsets = [0, 64], sizes = [8, 32], strides = [1, 1]} : vector<8x96xf32> to vector<8x32xf32>
    %341 = vector.extract_strided_slice %329 {offsets = [0, 64], sizes = [8, 32], strides = [1, 1]} : vector<8x96xf32> to vector<8x32xf32>
    %342 = arith.addf %341, %240 : vector<8x32xf32>
    %343 = arith.mulf %338, %342 : vector<8x32xf32>
    %344 = arith.addf %340, %343 : vector<8x32xf32>
    %345 = math.tanh %344 : vector<8x32xf32>
    %cst_85 = arith.constant 1.000000e+00 : f32
    %346 = vector.broadcast %cst_85 : f32 to vector<8x32xf32>
    %347 = arith.subf %346, %339 : vector<8x32xf32>
    %348 = arith.mulf %347, %345 : vector<8x32xf32>
    %349 = arith.mulf %339, %323 : vector<8x32xf32>
    %350 = arith.addf %348, %349 : vector<8x32xf32>
    %c3_86 = arith.constant 3 : index
    %c0_87 = arith.constant 0 : index
    %c0_88 = arith.constant 0 : index
    %351 = vector.load %arg11[%c3_86, %c0_87, %c0_88] : memref<8x8x32xf32, #tpu.memory_space<vmem>>, vector<1x8x32xf32>
    %352 = vector.shape_cast %351 : vector<1x8x32xf32> to vector<8x32xf32>
    %353 = vector.shape_cast %350 : vector<8x32xf32> to vector<1x8x32xf32>
    tpu.vector_store %arg11[%c3_86, %c0_87, %c0_88], %353 {strides = array<i32>} : memref<8x8x32xf32, #tpu.memory_space<vmem>>, vector<1x8x32xf32>,
    %354 = vector.extract_strided_slice %244 {offsets = [4, 0, 0], sizes = [1, 8, 96], strides = [1, 1, 1]} : vector<8x8x96xf32> to vector<1x8x96xf32>
    %355 = vector.shape_cast %354 : vector<1x8x96xf32> to vector<8x96xf32>
    %cst_89 = arith.constant dense<0.000000e+00> : vector<8x96xf32>
    %356 = tpu.matmul %350, %235, %cst_89 {dimension_numbers = #tpu.dot_dimension_numbers<[1], [0], [0], [1], [0, 0, 1, 1], [], []>} : vector<8x32xf32>, vector<32x96xf32>, vector<8x96xf32> -> vector<8x96xf32>
    %357 = vector.extract_strided_slice %355 {offsets = [0, 0], sizes = [8, 64], strides = [1, 1]} : vector<8x96xf32> to vector<8x64xf32>
    %358 = vector.extract_strided_slice %356 {offsets = [0, 0], sizes = [8, 64], strides = [1, 1]} : vector<8x96xf32> to vector<8x64xf32>
    %359 = arith.addf %357, %358 : vector<8x64xf32>
    %360 = arith.negf %359 : vector<8x64xf32>
    %361 = math.exp %360 : vector<8x64xf32>
    %cst_90 = arith.constant 1.000000e+00 : f32
    %362 = vector.broadcast %cst_90 : f32 to vector<8x64xf32>
    %363 = arith.addf %362, %361 : vector<8x64xf32>
    %364 = arith.divf %362, %363 : vector<8x64xf32>
    %365 = vector.extract_strided_slice %364 {offsets = [0, 0], sizes = [8, 32], strides = [1, 1]} : vector<8x64xf32> to vector<8x32xf32>
    %366 = vector.extract_strided_slice %364 {offsets = [0, 32], sizes = [8, 32], strides = [1, 1]} : vector<8x64xf32> to vector<8x32xf32>
    %367 = vector.extract_strided_slice %355 {offsets = [0, 64], sizes = [8, 32], strides = [1, 1]} : vector<8x96xf32> to vector<8x32xf32>
    %368 = vector.extract_strided_slice %356 {offsets = [0, 64], sizes = [8, 32], strides = [1, 1]} : vector<8x96xf32> to vector<8x32xf32>
    %369 = arith.addf %368, %240 : vector<8x32xf32>
    %370 = arith.mulf %365, %369 : vector<8x32xf32>
    %371 = arith.addf %367, %370 : vector<8x32xf32>
    %372 = math.tanh %371 : vector<8x32xf32>
    %cst_91 = arith.constant 1.000000e+00 : f32
    %373 = vector.broadcast %cst_91 : f32 to vector<8x32xf32>
    %374 = arith.subf %373, %366 : vector<8x32xf32>
    %375 = arith.mulf %374, %372 : vector<8x32xf32>
    %376 = arith.mulf %366, %350 : vector<8x32xf32>
    %377 = arith.addf %375, %376 : vector<8x32xf32>
    %c4_92 = arith.constant 4 : index
    %c0_93 = arith.constant 0 : index
    %c0_94 = arith.constant 0 : index
    %378 = vector.load %arg11[%c4_92, %c0_93, %c0_94] : memref<8x8x32xf32, #tpu.memory_space<vmem>>, vector<1x8x32xf32>
    %379 = vector.shape_cast %378 : vector<1x8x32xf32> to vector<8x32xf32>
    %380 = vector.shape_cast %377 : vector<8x32xf32> to vector<1x8x32xf32>
    tpu.vector_store %arg11[%c4_92, %c0_93, %c0_94], %380 {strides = array<i32>} : memref<8x8x32xf32, #tpu.memory_space<vmem>>, vector<1x8x32xf32>,
    %381 = vector.extract_strided_slice %244 {offsets = [5, 0, 0], sizes = [1, 8, 96], strides = [1, 1, 1]} : vector<8x8x96xf32> to vector<1x8x96xf32>
    %382 = vector.shape_cast %381 : vector<1x8x96xf32> to vector<8x96xf32>
    %cst_95 = arith.constant dense<0.000000e+00> : vector<8x96xf32>
    %383 = tpu.matmul %377, %235, %cst_95 {dimension_numbers = #tpu.dot_dimension_numbers<[1], [0], [0], [1], [0, 0, 1, 1], [], []>} : vector<8x32xf32>, vector<32x96xf32>, vector<8x96xf32> -> vector<8x96xf32>
    %384 = vector.extract_strided_slice %382 {offsets = [0, 0], sizes = [8, 64], strides = [1, 1]} : vector<8x96xf32> to vector<8x64xf32>
    %385 = vector.extract_strided_slice %383 {offsets = [0, 0], sizes = [8, 64], strides = [1, 1]} : vector<8x96xf32> to vector<8x64xf32>
    %386 = arith.addf %384, %385 : vector<8x64xf32>
    %387 = arith.negf %386 : vector<8x64xf32>
    %388 = math.exp %387 : vector<8x64xf32>
    %cst_96 = arith.constant 1.000000e+00 : f32
    %389 = vector.broadcast %cst_96 : f32 to vector<8x64xf32>
    %390 = arith.addf %389, %388 : vector<8x64xf32>
    %391 = arith.divf %389, %390 : vector<8x64xf32>
    %392 = vector.extract_strided_slice %391 {offsets = [0, 0], sizes = [8, 32], strides = [1, 1]} : vector<8x64xf32> to vector<8x32xf32>
    %393 = vector.extract_strided_slice %391 {offsets = [0, 32], sizes = [8, 32], strides = [1, 1]} : vector<8x64xf32> to vector<8x32xf32>
    %394 = vector.extract_strided_slice %382 {offsets = [0, 64], sizes = [8, 32], strides = [1, 1]} : vector<8x96xf32> to vector<8x32xf32>
    %395 = vector.extract_strided_slice %383 {offsets = [0, 64], sizes = [8, 32], strides = [1, 1]} : vector<8x96xf32> to vector<8x32xf32>
    %396 = arith.addf %395, %240 : vector<8x32xf32>
    %397 = arith.mulf %392, %396 : vector<8x32xf32>
    %398 = arith.addf %394, %397 : vector<8x32xf32>
    %399 = math.tanh %398 : vector<8x32xf32>
    %cst_97 = arith.constant 1.000000e+00 : f32
    %400 = vector.broadcast %cst_97 : f32 to vector<8x32xf32>
    %401 = arith.subf %400, %393 : vector<8x32xf32>
    %402 = arith.mulf %401, %399 : vector<8x32xf32>
    %403 = arith.mulf %393, %377 : vector<8x32xf32>
    %404 = arith.addf %402, %403 : vector<8x32xf32>
    %c5_98 = arith.constant 5 : index
    %c0_99 = arith.constant 0 : index
    %c0_100 = arith.constant 0 : index
    %405 = vector.load %arg11[%c5_98, %c0_99, %c0_100] : memref<8x8x32xf32, #tpu.memory_space<vmem>>, vector<1x8x32xf32>
    %406 = vector.shape_cast %405 : vector<1x8x32xf32> to vector<8x32xf32>
    %407 = vector.shape_cast %404 : vector<8x32xf32> to vector<1x8x32xf32>
    tpu.vector_store %arg11[%c5_98, %c0_99, %c0_100], %407 {strides = array<i32>} : memref<8x8x32xf32, #tpu.memory_space<vmem>>, vector<1x8x32xf32>,
    %408 = vector.extract_strided_slice %244 {offsets = [6, 0, 0], sizes = [1, 8, 96], strides = [1, 1, 1]} : vector<8x8x96xf32> to vector<1x8x96xf32>
    %409 = vector.shape_cast %408 : vector<1x8x96xf32> to vector<8x96xf32>
    %cst_101 = arith.constant dense<0.000000e+00> : vector<8x96xf32>
    %410 = tpu.matmul %404, %235, %cst_101 {dimension_numbers = #tpu.dot_dimension_numbers<[1], [0], [0], [1], [0, 0, 1, 1], [], []>} : vector<8x32xf32>, vector<32x96xf32>, vector<8x96xf32> -> vector<8x96xf32>
    %411 = vector.extract_strided_slice %409 {offsets = [0, 0], sizes = [8, 64], strides = [1, 1]} : vector<8x96xf32> to vector<8x64xf32>
    %412 = vector.extract_strided_slice %410 {offsets = [0, 0], sizes = [8, 64], strides = [1, 1]} : vector<8x96xf32> to vector<8x64xf32>
    %413 = arith.addf %411, %412 : vector<8x64xf32>
    %414 = arith.negf %413 : vector<8x64xf32>
    %415 = math.exp %414 : vector<8x64xf32>
    %cst_102 = arith.constant 1.000000e+00 : f32
    %416 = vector.broadcast %cst_102 : f32 to vector<8x64xf32>
    %417 = arith.addf %416, %415 : vector<8x64xf32>
    %418 = arith.divf %416, %417 : vector<8x64xf32>
    %419 = vector.extract_strided_slice %418 {offsets = [0, 0], sizes = [8, 32], strides = [1, 1]} : vector<8x64xf32> to vector<8x32xf32>
    %420 = vector.extract_strided_slice %418 {offsets = [0, 32], sizes = [8, 32], strides = [1, 1]} : vector<8x64xf32> to vector<8x32xf32>
    %421 = vector.extract_strided_slice %409 {offsets = [0, 64], sizes = [8, 32], strides = [1, 1]} : vector<8x96xf32> to vector<8x32xf32>
    %422 = vector.extract_strided_slice %410 {offsets = [0, 64], sizes = [8, 32], strides = [1, 1]} : vector<8x96xf32> to vector<8x32xf32>
    %423 = arith.addf %422, %240 : vector<8x32xf32>
    %424 = arith.mulf %419, %423 : vector<8x32xf32>
    %425 = arith.addf %421, %424 : vector<8x32xf32>
    %426 = math.tanh %425 : vector<8x32xf32>
    %cst_103 = arith.constant 1.000000e+00 : f32
    %427 = vector.broadcast %cst_103 : f32 to vector<8x32xf32>
    %428 = arith.subf %427, %420 : vector<8x32xf32>
    %429 = arith.mulf %428, %426 : vector<8x32xf32>
    %430 = arith.mulf %420, %404 : vector<8x32xf32>
    %431 = arith.addf %429, %430 : vector<8x32xf32>
    %c6_104 = arith.constant 6 : index
    %c0_105 = arith.constant 0 : index
    %c0_106 = arith.constant 0 : index
    %432 = vector.load %arg11[%c6_104, %c0_105, %c0_106] : memref<8x8x32xf32, #tpu.memory_space<vmem>>, vector<1x8x32xf32>
    %433 = vector.shape_cast %432 : vector<1x8x32xf32> to vector<8x32xf32>
    %434 = vector.shape_cast %431 : vector<8x32xf32> to vector<1x8x32xf32>
    tpu.vector_store %arg11[%c6_104, %c0_105, %c0_106], %434 {strides = array<i32>} : memref<8x8x32xf32, #tpu.memory_space<vmem>>, vector<1x8x32xf32>,
    %435 = vector.extract_strided_slice %244 {offsets = [7, 0, 0], sizes = [1, 8, 96], strides = [1, 1, 1]} : vector<8x8x96xf32> to vector<1x8x96xf32>
    %436 = vector.shape_cast %435 : vector<1x8x96xf32> to vector<8x96xf32>
    %cst_107 = arith.constant dense<0.000000e+00> : vector<8x96xf32>
    %437 = tpu.matmul %431, %235, %cst_107 {dimension_numbers = #tpu.dot_dimension_numbers<[1], [0], [0], [1], [0, 0, 1, 1], [], []>} : vector<8x32xf32>, vector<32x96xf32>, vector<8x96xf32> -> vector<8x96xf32>
    %438 = vector.extract_strided_slice %436 {offsets = [0, 0], sizes = [8, 64], strides = [1, 1]} : vector<8x96xf32> to vector<8x64xf32>
    %439 = vector.extract_strided_slice %437 {offsets = [0, 0], sizes = [8, 64], strides = [1, 1]} : vector<8x96xf32> to vector<8x64xf32>
    %440 = arith.addf %438, %439 : vector<8x64xf32>
    %441 = arith.negf %440 : vector<8x64xf32>
    %442 = math.exp %441 : vector<8x64xf32>
    %cst_108 = arith.constant 1.000000e+00 : f32
    %443 = vector.broadcast %cst_108 : f32 to vector<8x64xf32>
    %444 = arith.addf %443, %442 : vector<8x64xf32>
    %445 = arith.divf %443, %444 : vector<8x64xf32>
    %446 = vector.extract_strided_slice %445 {offsets = [0, 0], sizes = [8, 32], strides = [1, 1]} : vector<8x64xf32> to vector<8x32xf32>
    %447 = vector.extract_strided_slice %445 {offsets = [0, 32], sizes = [8, 32], strides = [1, 1]} : vector<8x64xf32> to vector<8x32xf32>
    %448 = vector.extract_strided_slice %436 {offsets = [0, 64], sizes = [8, 32], strides = [1, 1]} : vector<8x96xf32> to vector<8x32xf32>
    %449 = vector.extract_strided_slice %437 {offsets = [0, 64], sizes = [8, 32], strides = [1, 1]} : vector<8x96xf32> to vector<8x32xf32>
    %450 = arith.addf %449, %240 : vector<8x32xf32>
    %451 = arith.mulf %446, %450 : vector<8x32xf32>
    %452 = arith.addf %448, %451 : vector<8x32xf32>
    %453 = math.tanh %452 : vector<8x32xf32>
    %cst_109 = arith.constant 1.000000e+00 : f32
    %454 = vector.broadcast %cst_109 : f32 to vector<8x32xf32>
    %455 = arith.subf %454, %447 : vector<8x32xf32>
    %456 = arith.mulf %455, %453 : vector<8x32xf32>
    %457 = arith.mulf %447, %431 : vector<8x32xf32>
    %458 = arith.addf %456, %457 : vector<8x32xf32>
    %c7_110 = arith.constant 7 : index
    %c0_111 = arith.constant 0 : index
    %c0_112 = arith.constant 0 : index
    %459 = vector.load %arg11[%c7_110, %c0_111, %c0_112] : memref<8x8x32xf32, #tpu.memory_space<vmem>>, vector<1x8x32xf32>
    %460 = vector.shape_cast %459 : vector<1x8x32xf32> to vector<8x32xf32>
    %461 = vector.shape_cast %458 : vector<8x32xf32> to vector<1x8x32xf32>
    tpu.vector_store %arg11[%c7_110, %c0_111, %c0_112], %461 {strides = array<i32>} : memref<8x8x32xf32, #tpu.memory_space<vmem>>, vector<1x8x32xf32>,
    %c0_113 = arith.constant 0 : index
    %c0_114 = arith.constant 0 : index
    %c0_115 = arith.constant 0 : index
    %462 = vector.load %arg11[%c0_113, %c0_114, %c0_115] : memref<8x8x32xf32, #tpu.memory_space<vmem>>, vector<8x8x32xf32>
    %463 = vector.shape_cast %462 : vector<8x8x32xf32> to vector<64x32xf32>
    %cst_116 = arith.constant dense<0.000000e+00> : vector<64x4xf32>
    %464 = tpu.matmul %463, %0, %cst_116 {dimension_numbers = #tpu.dot_dimension_numbers<[1], [0], [0], [1], [0, 0, 1, 1], [], []>} : vector<64x32xf32>, vector<32x4xf32>, vector<64x4xf32> -> vector<64x4xf32>
    %465 = vector.broadcast %1 : vector<1x4xf32> to vector<64x4xf32>
    %466 = arith.addf %464, %465 : vector<64x4xf32>
    %467 = vector.shape_cast %466 : vector<64x4xf32> to vector<8x8x4xf32>
    %c0_117 = arith.constant 0 : index
    %c0_118 = arith.constant 0 : index
    %c0_119 = arith.constant 0 : index
    %468 = vector.load %arg10[%c0_117, %c0_118, %c0_119] : memref<8x8x4xf32, #tpu.memory_space<vmem>>, vector<8x8x4xf32>
    tpu.vector_store %arg10[%c0_117, %c0_118, %c0_119], %467 {strides = array<i32>} : memref<8x8x4xf32, #tpu.memory_space<vmem>>, vector<8x8x4xf32>,
    return
  }
  func.func @transform_0(%arg0: i32) -> (i32, i32, i32) {
    %c0_i32 = arith.constant 0 : i32
    %c0_i32_0 = arith.constant 0 : i32
    %c0_i32_1 = arith.constant 0 : i32
    return %c0_i32, %arg0, %c0_i32_0 : i32, i32, i32
  }
  func.func @transform_1(%arg0: i32) -> (i32, i32) {
    %c0_i32 = arith.constant 0 : i32
    %c0_i32_0 = arith.constant 0 : i32
    %c0_i32_1 = arith.constant 0 : i32
    return %c0_i32, %c0_i32_0 : i32, i32
  }
  func.func @transform_2(%arg0: i32) -> (i32, i32) {
    %c0_i32 = arith.constant 0 : i32
    %c0_i32_0 = arith.constant 0 : i32
    %c0_i32_1 = arith.constant 0 : i32
    return %c0_i32, %c0_i32_0 : i32, i32
  }
  func.func @transform_3(%arg0: i32) -> (i32, i32) {
    %c0_i32 = arith.constant 0 : i32
    %c0_i32_0 = arith.constant 0 : i32
    %c0_i32_1 = arith.constant 0 : i32
    return %c0_i32, %c0_i32_0 : i32, i32
  }
  func.func @transform_4(%arg0: i32) -> (i32, i32) {
    %c0_i32 = arith.constant 0 : i32
    %c0_i32_0 = arith.constant 0 : i32
    %c0_i32_1 = arith.constant 0 : i32
    return %c0_i32, %c0_i32_0 : i32, i32
  }
  func.func @transform_5(%arg0: i32) -> (i32, i32) {
    %c0_i32 = arith.constant 0 : i32
    %c0_i32_0 = arith.constant 0 : i32
    %c0_i32_1 = arith.constant 0 : i32
    return %c0_i32, %c0_i32_0 : i32, i32
  }
  func.func @transform_6(%arg0: i32) -> (i32, i32) {
    %c0_i32 = arith.constant 0 : i32
    %c0_i32_0 = arith.constant 0 : i32
    %c0_i32_1 = arith.constant 0 : i32
    return %c0_i32, %c0_i32_0 : i32, i32
  }
  func.func @transform_7(%arg0: i32) -> (i32, i32) {
    %c0_i32 = arith.constant 0 : i32
    %c0_i32_0 = arith.constant 0 : i32
    %c0_i32_1 = arith.constant 0 : i32
    return %c0_i32, %c0_i32_0 : i32, i32
  }
  func.func @transform_8(%arg0: i32) -> (i32, i32) {
    %c0_i32 = arith.constant 0 : i32
    %c0_i32_0 = arith.constant 0 : i32
    %c0_i32_1 = arith.constant 0 : i32
    return %c0_i32, %c0_i32_0 : i32, i32
  }
  func.func @transform_9(%arg0: i32) -> (i32, i32, i32) {
    %c0_i32 = arith.constant 0 : i32
    %c0_i32_0 = arith.constant 0 : i32
    %c0_i32_1 = arith.constant 0 : i32
    return %c0_i32, %arg0, %c0_i32_0 : i32, i32, i32
  }
}

</mosaic_0001>

<bundles_post_ra>
// kernel: tpu_custom_call.1
= control target key start
LH: loop header
LB: loop body
LE: loop exit
PB: predicated region body
PF: predicated region fallthrough
CT: control target
= control target key end

     0   :  { %vm84_vm0 = vcmask 1043456   ;;  %vm59_vm1 = vcmask 31744   ;;  %v51_v3 = vlaneseq  ;;  %v2795_v10 = vmov 0.0|0.0   ;;  %s3306_s1 = inlined_call_operand.vmem [shape: f32[4,96], index: 1, kind: input, shape index: {}]   ;;  %s3307_s0 = inlined_call_operand.vmem [shape: f32[8,8,4], index: 0, kind: input, shape index: {}]   ;;  %s3308_s2 = inlined_call_operand.vmem [shape: f32[32,96], index: 2, kind: input, shape index: {}]   ;;  %s3309_s3 = inlined_call_operand.vmem [shape: f32[2,96], index: 3, kind: input, shape index: {}]   ;;  %s3310_s4 = inlined_call_operand.vmem [shape: f32[32,96], index: 4, kind: input, shape index: {}]   ;;  %s3311_s5 = inlined_call_operand.vmem [shape: f32[32,96], index: 5, kind: input, shape index: {}]   ;;  %s3312_s6 = inlined_call_operand.vmem [shape: f32[2,96], index: 6, kind: input, shape index: {}]   ;;  %s3313_s7 = inlined_call_operand.vmem [shape: f32[32,4], index: 7, kind: input, shape index: {}]   ;;  %s3314_s8 = inlined_call_operand.vmem [shape: f32[1,4], index: 8, kind: input, shape index: {}]   ;;  %s3315_s9 = inlined_call_operand.vmem [shape: f32[8,8,4], index: 9, kind: output, shape index: {}]  }
   0x1   :  { %v45_v0 = vld [vmem:[%s3306_s1] sm:$0xf]  ;;  %v42_v2 = vld [vmem:[%s3307_s0 + $0x28] sm:$0xff]  ;;  %v43_v6 = vld [vmem:[%s3307_s0 + $0x30] sm:$0xff]  ;;  %vm2796_vm2 = vmmov 0   ;;  %v2797_v19 = vmov 0.0  }
   0x2   :  { %v41_v1 = vld [vmem:[%s3307_s0 + $0x20] sm:$0xff]  ;;  %2692 = vmatprep.subr.msk.mxu1 %vm84_vm0, %v45_v0  ;;  %v47_v5 = vld [vmem:[%s3308_s2 + $0x8] sm:$0xff]  ;;  %2350 = vmatprep.subr.msk.mxu0 %vm84_vm0, %v45_v0  ;;  %v48_v8 = vld [vmem:[%s3308_s2 + $0x10] sm:$0xff]  ;;  %v2877_v9 = vshrl.u32 %v51_v3, 7  ;;  %vm193_vm3 = vcmask 261120  }
   0x3   :  { %2358 = vmatprep.mubr.msk.f32.mxu1 %vm59_vm1, %v41_v1  ;;  %v46_v4 = vld [vmem:[%s3308_s2] sm:$0xff]  ;;  %2693 = vmatpush3.msk.msra.mxu1 %vm84_vm0, %v45_v0  ;;  %v49_v12 = vld [vmem:[%s3308_s2 + $0x18] sm:$0xff]  ;;  %v38_v16 = vld [vmem:[%s3307_s0 + $0x8] sm:$0xff]  ;;  %s2798_s2 = smov 64  }
   0x4   :  { %v2871_v7 = vpack.c.bf16 %v47_v5, %v46_v4  ;;  %2359 = vmatmul.mubr.msk.f32.vlgmr.msra.gmra.mrb[0].mxu1 %vm59_vm1, %v42_v2  ;;  %2580 = vmatprep.subr.bf16.mxu1 %v2795_v10  ;;  %v37_v11 = vld [vmem:[%s3307_s0] sm:$0xff]  ;;  %v44_v14 = vld [vmem:[%s3307_s0 + $0x38] sm:$0xff]  ;;  %v2895_v15 = vpack.c.bf16 %v49_v12, %v48_v8  ;;  %v53_v17 = vsub.s32 1, %v2877_v9  ;;  %v57_v30 = vsub.s32 0, %v2877_v9  ;;  %v39_v62 = vld [vmem:[%s3307_s0 + $0x10] sm:$0xff] }
   0x5   :  { %v50_v13 = vld [vmem:[%s3309_s3] sm:$0x3]  ;;  %2361 = vmatprep.mubr.msk.f32.mxu1 %vm59_vm1, %v43_v6  ;;  %2351 = vmatpush3.msk.msra.mxu0 %vm84_vm0, %v45_v0  ;;  %s2799_s3 = smov 96   ;;  %v40_v63 = vld [vmem:[%s3307_s0 + $0x18] sm:$0xff] }
   0x6   :  { %2582 = vmatpush3.bf16.msra.mxu1 %v2871_v7  ;;  %2352 = vmatprep.mubr.msk.f32.mxu0 %vm59_vm1, %v37_v11  ;;  %v54_v18 = vrot.slane %v50_v13, %v53_v17  ;;  %v2940_v31 = vrot.slane %v50_v13, %v57_v30 }
   0x7   :  { %2583 = vmatprep.subr.bf16.mxu1 %v2795_v10  ;;  %2592 = vmatprep.subr.bf16.mxu0 %v2795_v10 }
   0x8   :  { %2362 = vmatmul.mubr.msk.f32.gmra.mrb[2].mxu1 %vm59_vm1, %v44_v14  ;;  %2353 = vmatmul.mubr.msk.f32.vlgmr.msra.gmra.mrb[0].mxu0 %vm59_vm1, %v38_v16 }
   0x9   :  { %2372 = vmatprep.mubr.msk.f32.mxu1 %vm2796_vm2, %v2797_v19  ;;  %275 = vrot.lane.b32.xlu0 %v54_v18, %s2798_s2 }
   0xa   :  { %2585 = vmatpush3.bf16.msra.mxu1 %v2895_v15  ;;  %2594 = vmatpush3.bf16.msra.mxu0 %v2871_v7 }
   0xb   :  { %2586 = vmatprep.subr.bf16.mxu1 %v2795_v10  ;;  %2595 = vmatprep.subr.bf16.mxu0 %v2795_v10 }
   0xc   :  { %2355 = vmatprep.mubr.msk.f32.mxu0 %vm59_vm1, %v39_v62 }
   0xd   :  { %2373 = vmatmul.mubr.f32.vlgmr.msra.gmra.mrb[4].mxu1 %v2797_v19  ;;  %2356 = vmatmul.mubr.msk.f32.gmra.mrb[2].mxu0 %vm59_vm1, %v40_v63 }
   0xe   :  { %2588 = vmatpush3.bf16.msra.mxu1 %v2871_v7  ;;  %2383 = vmatprep.mubr.msk.f32.mxu1 %vm2796_vm2, %v2797_v19 }
   0xf   :  { %2589 = vmatprep.subr.bf16.mxu1 %v2795_v10  ;;  %2597 = vmatpush3.bf16.msra.mxu0 %v2895_v15 }
  0x10   :  { %2604 = vmatprep.subr.bf16.mxu0 %v2795_v10  ;;  %2394 = vmatprep.mubr.msk.f32.mxu0 %vm2796_vm2, %v2797_v19 }
  0x12   :  { %2591 = vmatpush3.bf16.msra.mxu1 %v2895_v15 }
  0x13   :  { %2598 = vmatprep.subr.bf16.mxu1 %v2795_v10 }
  0x7b   :  { %v2933_v26 = vpop.permute.xlu0 %275 }
  0xd7   :  { %v2925_v20 = vpop.f32.mrb[0].mxu1 }
  0xd8   :  { %v2927_v21 = vpop.f32.mrb[1].mxu1 }
  0xdb   :  { %v2929_v22 = vpop.f32.mrb[2].mxu1  ;;  %v2354_v23 = vpop.f32.mrb[0].mxu0 }
  0xdc   :  { %v2931_v24 = vpop.f32.mrb[3].mxu1  ;;  %v154_v25 = vpop.f32.mrb[1].mxu0  ;;  %v160_v52 = vadd.f32 %v2354_v23, %v2940_v31 }
  0xdd   :  { %v155_v32 = vadd.f32 %v154_v25, %v2940_v31 }
  0xe0   :  { %v263_v27 = vpop.f32.mrb[4].mxu1  ;;  %v2357_v6 = vpop.f32.mrb[2].mxu0 }
  0xe1   :  { %v278_v28 = vadd.f32 %v2933_v26, %v263_v27  ;;  %v2374_v29 = vpop.f32.mrb[5].mxu1  ;;  %v267_v33 = vadd.f32 %v263_v27, %v155_v32  ;;  %v164_v8 = vpop.f32.mrb[3].mxu0 }
  0xe2   :  { %v165_v16 = vadd.f32 %v164_v8, %v2940_v31 }
  0xe3   :  { %280 = vrot.lane.b32.xlu0 %v278_v28, %s2798_s2  ;;  %v2190_v34 = vmul.f32 -1.442695, %v267_v33 }
  0xe5   :  { %2699 = vpow2.f32 %v2190_v34 }
  0xef   :  { %v2700_v35 = vpop.eup %2699 }
  0xf0   :  { %v271_v36 = vadd.f32 1.0, %v2700_v35 }
  0xf2   :  { %2701 = vrcp.f32 %v271_v36 }
  0xfc   :  { %v2702_v37 = vpop.eup %2701 }
  0xfd   :  { %v290_v43 = vsub.f32 1.0, %v2702_v37  ;;  %v296_v45 = vmul.f32 0.0, %v2702_v37 }
 0x155   :  { %v281_v38 = vpop.permute.xlu0 %280 }
 0x156   :  { %v283_v39 = vmul.f32 %v2702_v37, %v281_v38 }
 0x158   :  { %285 = vrot.lane.b32.xlu1 %v283_v39, %s2798_s2 }
 0x1ca   :  { %v286_v40 = vpop.permute.xlu1 %285 }
 0x1cb   :  { %v288_v41 = vadd.f32 %v286_v40, %v155_v32 }
 0x1cd   :  { %2703 = vtanh.f32 %v288_v41 }
 0x1d7   :  { %v2704_v42 = vpop.eup %2703 }
 0x1d8   :  { %292 = vrot.lane.b32.xlu1 %v2704_v42, %s2799_s3 }
 0x24a   :  { %v293_v44 = vpop.permute.xlu1 %292 }
 0x24b   :  { %v295_v46 = vmul.f32 %v293_v44, %v290_v43 }
 0x24d   :  { %v297_v47 = vadd.f32 %v296_v45, %v295_v46  ;;  %v170_v45 = vadd.f32 %v2357_v6, %v2940_v31 }
 0x24f   :  { %299 = vrot.lane.b32.xlu0 %v297_v47, %s2799_s3 }
 0x2c1   :  { %v300_v48 = vpop.permute.xlu0 %299 }
 0x2c2   :  { %302 = vst.msk [vmem:[#allocation2] sm:$0xff] %vm193_vm3, %v300_v48  ;;  %2384 = vmatmul.mubr.msk.f32.vlgmr.msra.gmra.mrb[6].mxu1 %vm193_vm3, %v300_v48 }
 0x2c3   :  { %2600 = vmatpush3.bf16.msra.mxu1 %v2871_v7  ;;  %2405 = vmatprep.mubr.msk.f32.mxu1 %vm2796_vm2, %v2797_v19 }
 0x2c4   :  { %2601 = vmatprep.subr.bf16.mxu1 %v2795_v10 }
 0x2c7   :  { %2603 = vmatpush3.bf16.msra.mxu1 %v2895_v15 }
 0x2c8   :  { %2610 = vmatprep.subr.bf16.mxu1 %v2795_v10 }
 0x395   :  { %v371_v49 = vpop.f32.mrb[6].mxu1 }
 0x396   :  { %v382_v50 = vadd.f32 %v371_v49, %v2933_v26  ;;  %v2385_v51 = vpop.f32.mrb[7].mxu1  ;;  %v375_v53 = vadd.f32 %v371_v49, %v160_v52 }
 0x398   :  { %384 = vrot.lane.b32.xlu1 %v382_v50, %s2798_s2  ;;  %v2192_v54 = vmul.f32 -1.442695, %v375_v53 }
 0x39a   :  { %2705 = vpow2.f32 %v2192_v54 }
 0x3a4   :  { %v2706_v55 = vpop.eup %2705 }
 0x3a5   :  { %v379_v56 = vadd.f32 1.0, %v2706_v55 }
 0x3a7   :  { %2707 = vrcp.f32 %v379_v56 }
 0x3b1   :  { %v2708_v57 = vpop.eup %2707 }
 0x3b2   :  { %v394_v1 = vsub.f32 1.0, %v2708_v57  ;;  %v400_v3 = vmul.f32 %v2708_v57, %v297_v47 }
 0x40a   :  { %v385_v58 = vpop.permute.xlu1 %384 }
 0x40b   :  { %v387_v59 = vmul.f32 %v2708_v57, %v385_v58 }
 0x40d   :  { %389 = vrot.lane.b32.xlu0 %v387_v59, %s2798_s2 }
 0x47f   :  { %v390_v60 = vpop.permute.xlu0 %389 }
 0x480   :  { %v392_v61 = vadd.f32 %v390_v60, %v160_v52 }
 0x482   :  { %2709 = vtanh.f32 %v392_v61 }
 0x48c   :  { %v2710_v0 = vpop.eup %2709 }
 0x48d   :  { %396 = vrot.lane.b32.xlu1 %v2710_v0, %s2799_s3 }
 0x4ff   :  { %v397_v2 = vpop.permute.xlu1 %396 }
 0x500   :  { %v399_v4 = vmul.f32 %v397_v2, %v394_v1  ;;  %v175_v1 = vadd.f32 %v2927_v21, %v2940_v31 }
 0x502   :  { %v401_v5 = vadd.f32 %v400_v3, %v399_v4 }
 0x504   :  { %403 = vrot.lane.b32.xlu0 %v401_v5, %s2799_s3 }
 0x576   :  { %v404_v11 = vpop.permute.xlu0 %403 }
 0x577   :  { %407 = vst.msk [vmem:[#allocation2 + $0x8] sm:$0xff] %vm193_vm3, %v404_v11  ;;  %2395 = vmatmul.mubr.msk.f32.vlgmr.msra.gmra.mrb[4].mxu0 %vm193_vm3, %v404_v11 }
 0x578   :  { %2606 = vmatpush3.bf16.msra.mxu0 %v2871_v7  ;;  %2416 = vmatprep.mubr.msk.f32.mxu0 %vm2796_vm2, %v2797_v19 }
 0x579   :  { %2607 = vmatprep.subr.bf16.mxu0 %v2795_v10 }
 0x57c   :  { %2609 = vmatpush3.bf16.msra.mxu0 %v2895_v15 }
 0x57d   :  { %2616 = vmatprep.subr.bf16.mxu0 %v2795_v10 }
 0x64a   :  { %v476_v12 = vpop.f32.mrb[4].mxu0 }
 0x64b   :  { %v487_v13 = vadd.f32 %v476_v12, %v2933_v26  ;;  %v2396_v14 = vpop.f32.mrb[5].mxu0  ;;  %v480_v18 = vadd.f32 %v476_v12, %v165_v16 }
 0x64d   :  { %489 = vrot.lane.b32.xlu1 %v487_v13, %s2798_s2  ;;  %v2194_v23 = vmul.f32 -1.442695, %v480_v18 }
 0x64f   :  { %2711 = vpow2.f32 %v2194_v23 }
 0x659   :  { %v2712_v25 = vpop.eup %2711 }
 0x65a   :  { %v484_v27 = vadd.f32 1.0, %v2712_v25 }
 0x65c   :  { %2713 = vrcp.f32 %v484_v27 }
 0x666   :  { %v2714_v28 = vpop.eup %2713 }
 0x667   :  { %v499_v36 = vsub.f32 1.0, %v2714_v28  ;;  %v505_v38 = vmul.f32 %v2714_v28, %v401_v5 }
 0x6bf   :  { %v490_v29 = vpop.permute.xlu1 %489 }
 0x6c0   :  { %v492_v32 = vmul.f32 %v2714_v28, %v490_v29 }
 0x6c2   :  { %494 = vrot.lane.b32.xlu0 %v492_v32, %s2798_s2 }
 0x734   :  { %v495_v33 = vpop.permute.xlu0 %494 }
 0x735   :  { %v497_v34 = vadd.f32 %v495_v33, %v165_v16  ;;  %v180_v33 = vadd.f32 %v2925_v20, %v2940_v31  ;;  %v1047_v20 = vld [vmem:[%s3310_s4 + $0x8] sm:$0xff] }
 0x737   :  { %2715 = vtanh.f32 %v497_v34 }
 0x741   :  { %v2716_v35 = vpop.eup %2715 }
 0x742   :  { %501 = vrot.lane.b32.xlu1 %v2716_v35, %s2799_s3 }
 0x7b4   :  { %v502_v37 = vpop.permute.xlu1 %501 }
 0x7b5   :  { %v504_v39 = vmul.f32 %v502_v37, %v499_v36 }
 0x7b7   :  { %v506_v40 = vadd.f32 %v505_v38, %v504_v39 }
 0x7b9   :  { %508 = vrot.lane.b32.xlu0 %v506_v40, %s2799_s3 }
 0x82b   :  { %v509_v41 = vpop.permute.xlu0 %508 }
 0x82c   :  { %512 = vst.msk [vmem:[#allocation2 + $0x10] sm:$0xff] %vm193_vm3, %v509_v41  ;;  %2406 = vmatmul.mubr.msk.f32.vlgmr.msra.gmra.mrb[8].mxu1 %vm193_vm3, %v509_v41  ;;  %v1046_v41 = vld [vmem:[%s3310_s4] sm:$0xff] }
 0x82d   :  { %2612 = vmatpush3.bf16.msra.mxu1 %v2871_v7  ;;  %2427 = vmatprep.mubr.msk.f32.mxu1 %vm2796_vm2, %v2797_v19 }
 0x82e   :  { %2613 = vmatprep.subr.bf16.mxu1 %v2795_v10 }
 0x831   :  { %2615 = vmatpush3.bf16.msra.mxu1 %v2895_v15 }
 0x832   :  { %2622 = vmatprep.subr.bf16.mxu1 %v2795_v10 }
 0x8ff   :  { %v581_v42 = vpop.f32.mrb[8].mxu1 }
 0x900   :  { %v592_v43 = vadd.f32 %v581_v42, %v2933_v26  ;;  %v2407_v44 = vpop.f32.mrb[9].mxu1  ;;  %v585_v46 = vadd.f32 %v581_v42, %v170_v45  ;;  %v2628_v42 = vpack.c.bf16 %v1047_v20, %v1046_v41 }
 0x902   :  { %594 = vrot.lane.b32.xlu1 %v592_v43, %s2798_s2  ;;  %v2196_v47 = vmul.f32 -1.442695, %v585_v46 }
 0x904   :  { %2717 = vpow2.f32 %v2196_v47 }
 0x90e   :  { %v2718_v48 = vpop.eup %2717 }
 0x90f   :  { %v589_v49 = vadd.f32 1.0, %v2718_v48 }
 0x911   :  { %2719 = vrcp.f32 %v589_v49  ;;  %v1048_v49 = vld [vmem:[%s3310_s4 + $0x10] sm:$0xff] }
 0x91b   :  { %v2720_v50 = vpop.eup %2719 }
 0x91c   :  { %v604_v56 = vsub.f32 1.0, %v2720_v50  ;;  %v610_v58 = vmul.f32 %v2720_v50, %v506_v40 }
 0x974   :  { %v595_v51 = vpop.permute.xlu1 %594 }
 0x975   :  { %v597_v52 = vmul.f32 %v2720_v50, %v595_v51  ;;  %v1049_v50 = vld [vmem:[%s3310_s4 + $0x18] sm:$0xff] }
 0x976   :  { %v2632_v51 = vpack.c.bf16 %v1049_v50, %v1048_v49 }
 0x977   :  { %599 = vrot.lane.b32.xlu0 %v597_v52, %s2798_s2 }
 0x9e9   :  { %v600_v53 = vpop.permute.xlu0 %599 }
 0x9ea   :  { %v602_v54 = vadd.f32 %v600_v53, %v170_v45  ;;  %v1038_v53 = vld [vmem:[#allocation2] sm:$0xff] }
 0x9ec   :  { %2721 = vtanh.f32 %v602_v54  ;;  %v1039_v54 = vld [vmem:[#allocation2 + $0x8] sm:$0xff] }
 0x9f6   :  { %v2722_v55 = vpop.eup %2721 }
 0x9f7   :  { %606 = vrot.lane.b32.xlu1 %v2722_v55, %s2799_s3  ;;  %v1040_v55 = vld [vmem:[#allocation2 + $0x10] sm:$0xff] }
 0xa69   :  { %v607_v57 = vpop.permute.xlu1 %606 }
 0xa6a   :  { %v609_v59 = vmul.f32 %v607_v57, %v604_v56 }
 0xa6c   :  { %v611_v60 = vadd.f32 %v610_v58, %v609_v59 }
 0xa6e   :  { %613 = vrot.lane.b32.xlu0 %v611_v60, %s2799_s3 }
 0xae0   :  { %v614_v61 = vpop.permute.xlu0 %613 }
 0xae1   :  { %617 = vst.msk [vmem:[#allocation2 + $0x18] sm:$0xff] %vm193_vm3, %v614_v61  ;;  %2417 = vmatmul.mubr.msk.f32.vlgmr.msra.gmra.mrb[6].mxu0 %vm193_vm3, %v614_v61 }
 0xae2   :  { %2618 = vmatpush3.bf16.msra.mxu0 %v2871_v7  ;;  %2438 = vmatprep.mubr.msk.f32.mxu0 %vm2796_vm2, %v2797_v19 }
 0xae3   :  { %2619 = vmatprep.subr.bf16.mxu0 %v2795_v10 }
 0xae6   :  { %2621 = vmatpush3.bf16.msra.mxu0 %v2895_v15 }
 0xae7   :  { %2629 = vmatprep.subr.bf16.mxu0 %v2628_v42 }
 0xae8   :  { %v1041_v56 = vld [vmem:[#allocation2 + $0x18] sm:$0xff] }
 0xbb4   :  { %v686_v62 = vpop.f32.mrb[6].mxu0 }
 0xbb5   :  { %v697_v63 = vadd.f32 %v686_v62, %v2933_v26  ;;  %v2418_v0 = vpop.f32.mrb[7].mxu0  ;;  %v690_v2 = vadd.f32 %v686_v62, %v175_v1 }
 0xbb7   :  { %699 = vrot.lane.b32.xlu1 %v697_v63, %s2798_s2  ;;  %v2198_v3 = vmul.f32 -1.442695, %v690_v2 }
 0xbb9   :  { %2723 = vpow2.f32 %v2198_v3 }
 0xbc3   :  { %v2724_v4 = vpop.eup %2723 }
 0xbc4   :  { %v694_v5 = vadd.f32 1.0, %v2724_v4  ;;  %v185_v4 = vadd.f32 %v2931_v24, %v2940_v31  ;;  %v1050_v24 = vld [vmem:[%s3311_s5] sm:$0xff] }
 0xbc6   :  { %2725 = vrcp.f32 %v694_v5 }
 0xbd0   :  { %v2726_v6 = vpop.eup %2725 }
 0xbd1   :  { %v709_v16 = vsub.f32 1.0, %v2726_v6  ;;  %v715_v21 = vmul.f32 %v2726_v6, %v611_v60 }
 0xc29   :  { %v700_v8 = vpop.permute.xlu1 %699 }
 0xc2a   :  { %v702_v11 = vmul.f32 %v2726_v6, %v700_v8 }
 0xc2c   :  { %704 = vrot.lane.b32.xlu0 %v702_v11, %s2798_s2 }
 0xc9e   :  { %v705_v12 = vpop.permute.xlu0 %704 }
 0xc9f   :  { %v707_v13 = vadd.f32 %v705_v12, %v175_v1 }
 0xca1   :  { %2727 = vtanh.f32 %v707_v13 }
 0xcab   :  { %v2728_v14 = vpop.eup %2727 }
 0xcac   :  { %711 = vrot.lane.b32.xlu1 %v2728_v14, %s2799_s3 }
 0xd1e   :  { %v712_v18 = vpop.permute.xlu1 %711 }
 0xd1f   :  { %v714_v23 = vmul.f32 %v712_v18, %v709_v16 }
 0xd21   :  { %v716_v25 = vadd.f32 %v715_v21, %v714_v23  ;;  %v1051_v23 = vld [vmem:[%s3311_s5 + $0x8] sm:$0xff] }
 0xd23   :  { %718 = vrot.lane.b32.xlu0 %v716_v25, %s2799_s3 }
 0xd95   :  { %v719_v27 = vpop.permute.xlu0 %718 }
 0xd96   :  { %722 = vst.msk [vmem:[#allocation2 + $0x20] sm:$0xff] %vm193_vm3, %v719_v27  ;;  %2428 = vmatmul.mubr.msk.f32.vlgmr.msra.gmra.mrb[10].mxu1 %vm193_vm3, %v719_v27  ;;  %v1052_v27 = vld [vmem:[%s3311_s5 + $0x10] sm:$0xff] }
 0xd97   :  { %2624 = vmatpush3.bf16.msra.mxu1 %v2871_v7  ;;  %2449 = vmatprep.mubr.msk.f32.mxu1 %vm2796_vm2, %v2797_v19 }
 0xd98   :  { %2625 = vmatprep.subr.bf16.mxu1 %v2795_v10 }
 0xd9b   :  { %2627 = vmatpush3.bf16.msra.mxu1 %v2895_v15 }
 0xd9c   :  { %2636 = vmatprep.subr.bf16.mxu1 %v2795_v10 }
 0xd9d   :  { %v1042_v57 = vld [vmem:[#allocation2 + $0x20] sm:$0xff] }
 0xe69   :  { %v791_v28 = vpop.f32.mrb[10].mxu1 }
 0xe6a   :  { %v802_v29 = vadd.f32 %v791_v28, %v2933_v26  ;;  %v2429_v32 = vpop.f32.mrb[11].mxu1  ;;  %v795_v34 = vadd.f32 %v791_v28, %v180_v33  ;;  %v1053_v28 = vld [vmem:[%s3311_s5 + $0x18] sm:$0xff] }
 0xe6b   :  { %v1054_v32 = vld [vmem:[%s3312_s6] sm:$0x3] }
 0xe6c   :  { %804 = vrot.lane.b32.xlu1 %v802_v29, %s2798_s2  ;;  %v2200_v7 = vmul.f32 -1.442695, %v795_v34  ;;  %v3085_v29 = vpack.c.bf16 %v1053_v28, %v1052_v27 }
 0xe6e   :  { %2729 = vpow2.f32 %v2200_v7  ;;  %v1058_v7 = vrot.slane %v1054_v32, %v53_v17 }
 0xe78   :  { %v2730_v35 = vpop.eup %2729 }
 0xe79   :  { %v799_v36 = vadd.f32 1.0, %v2730_v35 }
 0xe7b   :  { %2731 = vrcp.f32 %v799_v36 }
 0xe85   :  { %v2732_v37 = vpop.eup %2731 }
 0xe86   :  { %v814_v44 = vsub.f32 1.0, %v2732_v37  ;;  %v820_v46 = vmul.f32 %v2732_v37, %v716_v25  ;;  %v3075_v25 = vpack.c.bf16 %v1051_v23, %v1050_v24 }
 0xede   :  { %v805_v38 = vpop.permute.xlu1 %804 }
 0xedf   :  { %v807_v15 = vmul.f32 %v2732_v37, %v805_v38 }
 0xee1   :  { %809 = vrot.lane.b32.xlu0 %v807_v15, %s2798_s2 }
 0xf53   :  { %v810_v39 = vpop.permute.xlu0 %809 }
 0xf54   :  { %v812_v40 = vadd.f32 %v810_v39, %v180_v33 }
 0xf56   :  { %2733 = vtanh.f32 %v812_v40 }
 0xf60   :  { %v2734_v43 = vpop.eup %2733 }
 0xf61   :  { %816 = vrot.lane.b32.xlu1 %v2734_v43, %s2799_s3  ;;  %v3122_v43 = vrot.slane %v1054_v32, %v57_v30 }
 0xfd3   :  { %v817_v45 = vpop.permute.xlu1 %816 }
 0xfd4   :  { %v819_v47 = vmul.f32 %v817_v45, %v814_v44 }
 0xfd6   :  { %v3032_v48 = vadd.f32 %v820_v46, %v819_v47 }
 0xfd8   :  { %823 = vrot.lane.b32.xlu0 %v3032_v48, %s2799_s3 }
0x104a   :  { %v824_v52 = vpop.permute.xlu0 %823 }
0x104b   :  { %827 = vst.msk [vmem:[#allocation2 + $0x28] sm:$0xff] %vm193_vm3, %v824_v52  ;;  %2439 = vmatmul.mubr.msk.f32.vlgmr.msra.gmra.mrb[8].mxu0 %vm193_vm3, %v824_v52 }
0x104c   :  { %2631 = vmatpush3.bf16.msra.mxu0 %v2628_v42  ;;  %2460 = vmatprep.mubr.msk.f32.mxu0 %vm193_vm3, %v1038_v53 }
0x104d   :  { %2633 = vmatprep.subr.bf16.mxu0 %v2632_v51 }
0x1050   :  { %2635 = vmatpush3.bf16.msra.mxu0 %v2632_v51 }
0x1051   :  { %2648 = vmatprep.subr.bf16.mxu0 %v2795_v10 }
0x1052   :  { %v1043_v58 = vld [vmem:[#allocation2 + $0x28] sm:$0xff] }
0x1053   :  { %2461 = vmatmul.mubr.msk.f32.vlgmr.msra.gmra.mrb[10].mxu0 %vm193_vm3, %v1039_v54  ;;  %v190_v54 = vadd.f32 %v2929_v22, %v2940_v31 }
0x1054   :  { %2463 = vmatprep.mubr.msk.f32.mxu0 %vm193_vm3, %v1040_v55  ;;  %2650 = vmatpush3.bf16.msra.mxu0 %v3075_v25 }
0x1055   :  { %2651 = vmatprep.subr.bf16.mxu0 %v2795_v10 }
0x1057   :  { %2464 = vmatmul.mubr.msk.f32.gmra.mrb[12].mxu0 %vm193_vm3, %v1041_v56 }
0x1058   :  { %2466 = vmatprep.mubr.msk.f32.mxu0 %vm193_vm3, %v1042_v57  ;;  %2653 = vmatpush3.bf16.msra.mxu0 %v3085_v29 }
0x1059   :  { %2660 = vmatprep.subr.bf16.mxu0 %v2795_v10 }
0x105b   :  { %2467 = vmatmul.mubr.msk.f32.gmra.mrb[14].mxu0 %vm193_vm3, %v1043_v58 }
0x111e   :  { %v896_v59 = vpop.f32.mrb[8].mxu0 }
0x111f   :  { %v907_v60 = vadd.f32 %v896_v59, %v2933_v26  ;;  %v2440_v61 = vpop.f32.mrb[9].mxu0  ;;  %v900_v5 = vadd.f32 %v896_v59, %v185_v4 }
0x1121   :  { %909 = vrot.lane.b32.xlu1 %v907_v60, %s2798_s2  ;;  %v2202_v6 = vmul.f32 -1.442695, %v900_v5 }
0x1123   :  { %2735 = vpow2.f32 %v2202_v6 }
0x1126   :  { %v3053_v62 = vpop.f32.mrb[10].mxu0 }
0x1127   :  { %v3055_v63 = vpop.f32.mrb[11].mxu0  ;;  %v1159_v32 = vadd.f32 %v3053_v62, %v3122_v43 }
0x1128   :  { %v1154_v44 = vadd.f32 %v3055_v63, %v3122_v43 }
0x112a   :  { %v3057_v0 = vpop.f32.mrb[12].mxu0 }
0x112b   :  { %v3059_v1 = vpop.f32.mrb[13].mxu0 }
0x112d   :  { %v2736_v8 = vpop.eup %2735 }
0x112e   :  { %v3061_v2 = vpop.f32.mrb[14].mxu0  ;;  %v904_v11 = vadd.f32 1.0, %v2736_v8 }
0x112f   :  { %v3063_v3 = vpop.f32.mrb[15].mxu0 }
0x1130   :  { %2737 = vrcp.f32 %v904_v11 }
0x113a   :  { %v2738_v12 = vpop.eup %2737 }
0x113b   :  { %v919_v33 = vsub.f32 1.0, %v2738_v12  ;;  %v925_v35 = vmul.f32 %v2738_v12, %v3032_v48 }
0x1193   :  { %v910_v13 = vpop.permute.xlu1 %909 }
0x1194   :  { %v912_v14 = vmul.f32 %v2738_v12, %v910_v13 }
0x1196   :  { %914 = vrot.lane.b32.xlu0 %v912_v14, %s2798_s2 }
0x1208   :  { %v915_v16 = vpop.permute.xlu0 %914 }
0x1209   :  { %v917_v18 = vadd.f32 %v915_v16, %v185_v4 }
0x120b   :  { %2739 = vtanh.f32 %v917_v18 }
0x1215   :  { %v2740_v21 = vpop.eup %2739 }
0x1216   :  { %921 = vrot.lane.b32.xlu1 %v2740_v21, %s2799_s3 }
0x121a   :  { %1270 = vrot.lane.b32.xlu1 %v1058_v7, %s2798_s2 }
0x1288   :  { %v922_v34 = vpop.permute.xlu1 %921 }
0x1289   :  { %v924_v36 = vmul.f32 %v922_v34, %v919_v33 }
0x128b   :  { %v3096_v37 = vadd.f32 %v925_v35, %v924_v36 }
0x128c   :  { %v3116_v40 = vpop.permute.xlu1 %1270 }
0x128d   :  { %928 = vrot.lane.b32.xlu0 %v3096_v37, %s2799_s3 }
0x12ff   :  { %v929_v38 = vpop.permute.xlu0 %928 }
0x1300   :  { %932 = vst.msk [vmem:[#allocation2 + $0x30] sm:$0xff] %vm193_vm3, %v929_v38  ;;  %2450 = vmatmul.mubr.msk.f32.vlgmr.msra.gmra.mrb[12].mxu1 %vm193_vm3, %v929_v38 }
0x1301   :  { %2638 = vmatpush3.bf16.msra.mxu1 %v3075_v25  ;;  %2480 = vmatprep.mubr.msk.f32.mxu1 %vm2796_vm2, %v2797_v19 }
0x1302   :  { %2639 = vmatprep.subr.bf16.mxu1 %v2795_v10 }
0x1305   :  { %2641 = vmatpush3.bf16.msra.mxu1 %v3085_v29 }
0x1306   :  { %2642 = vmatprep.subr.bf16.mxu1 %v2795_v10 }
0x1307   :  { %v1044_v17 = vld [vmem:[#allocation2 + $0x30] sm:$0xff] }
0x1308   :  { %2481 = vmatmul.mubr.f32.vlgmr.msra.gmra.mrb[14].mxu1 %v2797_v19  ;;  %2469 = vmatprep.mubr.msk.f32.mxu0 %vm193_vm3, %v1044_v17 }
0x1309   :  { %2644 = vmatpush3.bf16.msra.mxu1 %v3075_v25  ;;  %2491 = vmatprep.mubr.msk.f32.mxu1 %vm2796_vm2, %v2797_v19 }
0x130a   :  { %2645 = vmatprep.subr.bf16.mxu1 %v2795_v10 }
0x130d   :  { %2647 = vmatpush3.bf16.msra.mxu1 %v3085_v29 }
0x130e   :  { %2654 = vmatprep.subr.bf16.mxu1 %v2795_v10 }
0x13d3   :  { %v1001_v15 = vpop.f32.mrb[12].mxu1 }
0x13d4   :  { %v2451_v39 = vpop.f32.mrb[13].mxu1  ;;  %v1012_v30 = vadd.f32 %v1001_v15, %v2933_v26  ;;  %v1005_v55 = vadd.f32 %v1001_v15, %v190_v54 }
0x13d6   :  { %v2204_v56 = vmul.f32 -1.442695, %v1005_v55 }
0x13db   :  { %v1258_v41 = vpop.f32.mrb[14].mxu1 }
0x13dc   :  { %v1273_v20 = vadd.f32 %v3116_v40, %v1258_v41  ;;  %v2482_v42 = vpop.f32.mrb[15].mxu1  ;;  %v1262_v45 = vadd.f32 %v1258_v41, %v1154_v44 }
0x13de   :  { %1275 = vrot.lane.b32.xlu0 %v1273_v20, %s2798_s2  ;;  %v2213_v46 = vmul.f32 -1.442695, %v1262_v45 }
0x13e0   :  { %2741 = vpow2.f32 %v2213_v46 }
0x13ea   :  { %v2742_v47 = vpop.eup %2741 }
0x13eb   :  { %v1266_v48 = vadd.f32 1.0, %v2742_v47 }
0x13ed   :  { %2743 = vrcp.f32 %v1266_v48 }
0x13f7   :  { %v2744_v49 = vpop.eup %2743 }
0x13f8   :  { %v1285_v59 = vsub.f32 1.0, %v2744_v49  ;;  %v1291_v61 = vmul.f32 0.0, %v2744_v49 }
0x1450   :  { %v1276_v50 = vpop.permute.xlu0 %1275 }
0x1451   :  { %v1278_v51 = vmul.f32 %v2744_v49, %v1276_v50 }
0x1453   :  { %1280 = vrot.lane.b32.xlu1 %v1278_v51, %s2798_s2  ;;  %v1164_v51 = vadd.f32 %v3059_v1, %v3122_v43 }
0x14c5   :  { %v1281_v52 = vpop.permute.xlu1 %1280 }
0x14c6   :  { %v1283_v53 = vadd.f32 %v1281_v52, %v1154_v44 }
0x14c8   :  { %2745 = vtanh.f32 %v1283_v53 }
0x14c9   :  { %2747 = vpow2.f32 %v2204_v56 }
0x14d2   :  { %v2746_v9 = vpop.eup %2745 }
0x14d3   :  { %1287 = vrot.lane.b32.xlu0 %v2746_v9, %s2799_s3  ;;  %v2748_v57 = vpop.eup %2747 }
0x14d4   :  { %v1009_v58 = vadd.f32 1.0, %v2748_v57 }
0x14d6   :  { %2749 = vrcp.f32 %v1009_v58 }
0x14d7   :  { %1014 = vrot.lane.b32.xlu0 %v1012_v30, %s2798_s2 }
0x14e0   :  { %v2750_v5 = vpop.eup %2749 }
0x14e1   :  { %v1024_v12 = vsub.f32 1.0, %v2750_v5  ;;  %v1030_v14 = vmul.f32 %v2750_v5, %v3096_v37 }
0x1545   :  { %v1288_v60 = vpop.permute.xlu0 %1287 }
0x1546   :  { %v1290_v63 = vmul.f32 %v1288_v60, %v1285_v59 }
0x1548   :  { %v1292_v4 = vadd.f32 %v1291_v61, %v1290_v63 }
0x1549   :  { %v1015_v6 = vpop.permute.xlu0 %1014 }
0x154a   :  { %v1017_v8 = vmul.f32 %v2750_v5, %v1015_v6  ;;  %1294 = vrot.lane.b32.xlu1 %v1292_v4, %s2799_s3 }
0x154c   :  { %1019 = vrot.lane.b32.xlu0 %v1017_v8, %s2798_s2 }
0x15bc   :  { %v1295_v26 = vpop.permute.xlu1 %1294 }
0x15bd   :  { %1297 = vst.msk [vmem:[#allocation2] sm:$0xff] %vm193_vm3, %v1295_v26  ;;  %2492 = vmatmul.mubr.msk.f32.vlgmr.msra.gmra.mrb[16].mxu1 %vm193_vm3, %v1295_v26 }
0x15be   :  { %v1020_v22 = vpop.permute.xlu0 %1019  ;;  %2656 = vmatpush3.bf16.msra.mxu1 %v3075_v25  ;;  %2513 = vmatprep.mubr.msk.f32.mxu1 %vm2796_vm2, %v2797_v19 }
0x15bf   :  { %v1022_v31 = vadd.f32 %v1020_v22, %v190_v54  ;;  %2657 = vmatprep.subr.bf16.mxu1 %v2795_v10  ;;  %v1169_v22 = vadd.f32 %v3057_v0, %v3122_v43 }
0x15c1   :  { %2751 = vtanh.f32 %v1022_v31 }
0x15c2   :  { %2659 = vmatpush3.bf16.msra.mxu1 %v3085_v29 }
0x15c3   :  { %2666 = vmatprep.subr.bf16.mxu1 %v2795_v10 }
0x15cb   :  { %v2752_v11 = vpop.eup %2751 }
0x15cc   :  { %1026 = vrot.lane.b32.xlu0 %v2752_v11, %s2799_s3 }
0x163e   :  { %v1027_v13 = vpop.permute.xlu0 %1026 }
0x163f   :  { %v1029_v16 = vmul.f32 %v1027_v13, %v1024_v12 }
0x1641   :  { %v1031_v18 = vadd.f32 %v1030_v14, %v1029_v16 }
0x1643   :  { %1033 = vrot.lane.b32.xlu0 %v1031_v18, %s2799_s3 }
0x1690   :  { %v1366_v21 = vpop.f32.mrb[16].mxu1 }
0x1691   :  { %v1377_v24 = vadd.f32 %v1366_v21, %v3116_v40  ;;  %v2493_v23 = vpop.f32.mrb[17].mxu1  ;;  %v1370_v33 = vadd.f32 %v1366_v21, %v1159_v32 }
0x1693   :  { %1379 = vrot.lane.b32.xlu1 %v1377_v24, %s2798_s2  ;;  %v2215_v34 = vmul.f32 -1.442695, %v1370_v33 }
0x1695   :  { %2753 = vpow2.f32 %v2215_v34 }
0x169f   :  { %v2754_v7 = vpop.eup %2753 }
0x16a0   :  { %v1374_v35 = vadd.f32 1.0, %v2754_v7 }
0x16a2   :  { %2755 = vrcp.f32 %v1374_v35 }
0x16ac   :  { %v2756_v36 = vpop.eup %2755 }
0x16ad   :  { %v1389_v20 = vsub.f32 1.0, %v2756_v36  ;;  %v1395_v44 = vmul.f32 %v2756_v36, %v1292_v4 }
0x16b5   :  { %v1034_v27 = vpop.permute.xlu0 %1033 }
0x16b6   :  { %1037 = vst.msk [vmem:[#allocation2 + $0x38] sm:$0xff] %vm193_vm3, %v1034_v27 }
0x16bd   :  { %v1045_v28 = vld [vmem:[#allocation2 + $0x38] sm:$0xff] }
0x16be   :  { %2470 = vmatmul.mubr.msk.f32.gmra.mrb[16].mxu0 %vm193_vm3, %v1045_v28 }
0x16bf   :  { %2502 = vmatprep.mubr.msk.f32.mxu0 %vm2796_vm2, %v2797_v19 }
0x1705   :  { %v1380_v37 = vpop.permute.xlu1 %1379 }
0x1706   :  { %v1382_v38 = vmul.f32 %v2756_v36, %v1380_v37  ;;  %v1174_v37 = vadd.f32 %v3063_v3, %v3122_v43 }
0x1708   :  { %1384 = vrot.lane.b32.xlu1 %v1382_v38, %s2798_s2 }
0x177a   :  { %v1385_v17 = vpop.permute.xlu1 %1384 }
0x177b   :  { %v1387_v15 = vadd.f32 %v1385_v17, %v1159_v32 }
0x177d   :  { %2757 = vtanh.f32 %v1387_v15 }
0x1787   :  { %v2758_v39 = vpop.eup %2757 }
0x1788   :  { %1391 = vrot.lane.b32.xlu1 %v2758_v39, %s2799_s3 }
0x1791   :  { %v3155_v41 = vpop.f32.mrb[16].mxu0 }
0x1792   :  { %v3157_v62 = vpop.f32.mrb[17].mxu0 }
0x17fa   :  { %v1392_v42 = vpop.permute.xlu1 %1391 }
0x17fb   :  { %v1394_v45 = vmul.f32 %v1392_v42, %v1389_v20 }
0x17fd   :  { %v1396_v46 = vadd.f32 %v1395_v44, %v1394_v45 }
0x17ff   :  { %1398 = vrot.lane.b32.xlu1 %v1396_v46, %s2799_s3 }
0x1871   :  { %v1399_v47 = vpop.permute.xlu1 %1398 }
0x1872   :  { %1401 = vst.msk [vmem:[#allocation2 + $0x8] sm:$0xff] %vm193_vm3, %v1399_v47  ;;  %2503 = vmatmul.mubr.msk.f32.vlgmr.msra.gmra.mrb[18].mxu0 %vm193_vm3, %v1399_v47 }
0x1873   :  { %2662 = vmatpush3.bf16.msra.mxu0 %v3075_v25  ;;  %2524 = vmatprep.mubr.msk.f32.mxu0 %vm2796_vm2, %v2797_v19 }
0x1874   :  { %2663 = vmatprep.subr.bf16.mxu0 %v2795_v10 }
0x1877   :  { %2665 = vmatpush3.bf16.msra.mxu0 %v3085_v29 }
0x1878   :  { %2672 = vmatprep.subr.bf16.mxu0 %v2795_v10 }
0x1945   :  { %v1470_v48 = vpop.f32.mrb[18].mxu0 }
0x1946   :  { %v1481_v49 = vadd.f32 %v1470_v48, %v3116_v40  ;;  %v2504_v50 = vpop.f32.mrb[19].mxu0  ;;  %v1474_v52 = vadd.f32 %v1470_v48, %v1164_v51 }
0x1948   :  { %1483 = vrot.lane.b32.xlu0 %v1481_v49, %s2798_s2  ;;  %v2217_v53 = vmul.f32 -1.442695, %v1474_v52 }
0x194a   :  { %2759 = vpow2.f32 %v2217_v53 }
0x1954   :  { %v2760_v9 = vpop.eup %2759 }
0x1955   :  { %v1478_v30 = vadd.f32 1.0, %v2760_v9 }
0x1957   :  { %2761 = vrcp.f32 %v1478_v30 }
0x1961   :  { %v2762_v54 = vpop.eup %2761 }
0x1962   :  { %v1493_v60 = vsub.f32 1.0, %v2762_v54  ;;  %v1499_v1 = vmul.f32 %v2762_v54, %v1396_v46 }
0x19ba   :  { %v1484_v55 = vpop.permute.xlu0 %1483 }
0x19bb   :  { %v1486_v56 = vmul.f32 %v2762_v54, %v1484_v55  ;;  %v1179_v54 = vadd.f32 %v3061_v2, %v3122_v43  ;;  %v33_v2 = vld [vmem:[%s3313_s7 + $0x8] sm:$0xff] }
0x19bd   :  { %1488 = vrot.lane.b32.xlu1 %v1486_v56, %s2798_s2 }
0x1a2f   :  { %v1489_v57 = vpop.permute.xlu1 %1488 }
0x1a30   :  { %v1491_v58 = vadd.f32 %v1489_v57, %v1164_v51 }
0x1a32   :  { %2763 = vtanh.f32 %v1491_v58 }
0x1a3c   :  { %v2764_v59 = vpop.eup %2763 }
0x1a3d   :  { %1495 = vrot.lane.b32.xlu0 %v2764_v59, %s2799_s3 }
0x1aaf   :  { %v1496_v61 = vpop.permute.xlu0 %1495 }
0x1ab0   :  { %v1498_v63 = vmul.f32 %v1496_v61, %v1493_v60  ;;  %v32_v60 = vld [vmem:[%s3313_s7] sm:$0xff] }
0x1ab1   :  { %v2684_v61 = vpack.c.bf16 %v33_v2, %v32_v60 }
0x1ab2   :  { %v1500_v4 = vadd.f32 %v1499_v1, %v1498_v63 }
0x1ab4   :  { %1502 = vrot.lane.b32.xlu1 %v1500_v4, %s2799_s3 }
0x1b26   :  { %v1503_v5 = vpop.permute.xlu1 %1502 }
0x1b27   :  { %1505 = vst.msk [vmem:[#allocation2 + $0x10] sm:$0xff] %vm193_vm3, %v1503_v5  ;;  %2514 = vmatmul.mubr.msk.f32.vlgmr.msra.gmra.mrb[18].mxu1 %vm193_vm3, %v1503_v5 }
0x1b28   :  { %2668 = vmatpush3.bf16.msra.mxu1 %v3075_v25  ;;  %2535 = vmatprep.mubr.msk.f32.mxu1 %vm2796_vm2, %v2797_v19 }
0x1b29   :  { %2669 = vmatprep.subr.bf16.mxu1 %v2795_v10 }
0x1b2c   :  { %2671 = vmatpush3.bf16.msra.mxu1 %v3085_v29 }
0x1b2d   :  { %2678 = vmatprep.subr.bf16.mxu1 %v2795_v10 }
0x1bfa   :  { %v1574_v6 = vpop.f32.mrb[18].mxu1 }
0x1bfb   :  { %v1585_v8 = vadd.f32 %v1574_v6, %v3116_v40  ;;  %v2515_v26 = vpop.f32.mrb[19].mxu1  ;;  %v1578_v31 = vadd.f32 %v1574_v6, %v1169_v22 }
0x1bfc   :  { %v34_v26 = vld [vmem:[%s3313_s7 + $0x10] sm:$0xff] }
0x1bfd   :  { %1587 = vrot.lane.b32.xlu0 %v1585_v8, %s2798_s2  ;;  %v2219_v11 = vmul.f32 -1.442695, %v1578_v31 }
0x1bff   :  { %2765 = vpow2.f32 %v2219_v11 }
0x1c09   :  { %v2766_v12 = vpop.eup %2765 }
0x1c0a   :  { %v1582_v13 = vadd.f32 1.0, %v2766_v12  ;;  %v2026_v12 = vld [vmem:[#allocation2] sm:$0xff] }
0x1c0c   :  { %2767 = vrcp.f32 %v1582_v13  ;;  %v2027_v13 = vld [vmem:[#allocation2 + $0x8] sm:$0xff] }
0x1c16   :  { %v2768_v14 = vpop.eup %2767 }
0x1c17   :  { %v1597_v27 = vsub.f32 1.0, %v2768_v14  ;;  %v1603_v0 = vmul.f32 %v2768_v14, %v1500_v4 }
0x1c6f   :  { %v1588_v16 = vpop.permute.xlu0 %1587 }
0x1c70   :  { %v1590_v18 = vmul.f32 %v2768_v14, %v1588_v16  ;;  %v2028_v14 = vld [vmem:[#allocation2 + $0x10] sm:$0xff] }
0x1c72   :  { %1592 = vrot.lane.b32.xlu1 %v1590_v18, %s2798_s2 }
0x1ce4   :  { %v1593_v21 = vpop.permute.xlu1 %1592 }
0x1ce5   :  { %v1595_v24 = vadd.f32 %v1593_v21, %v1169_v22  ;;  %v35_v22 = vld [vmem:[%s3313_s7 + $0x18] sm:$0xff] }
0x1ce6   :  { %v2688_v31 = vpack.c.bf16 %v35_v22, %v34_v26 }
0x1ce7   :  { %2769 = vtanh.f32 %v1595_v24 }
0x1cf1   :  { %v2770_v23 = vpop.eup %2769 }
0x1cf2   :  { %1599 = vrot.lane.b32.xlu0 %v2770_v23, %s2799_s3 }
0x1d64   :  { %v1600_v28 = vpop.permute.xlu0 %1599 }
0x1d65   :  { %v1602_v32 = vmul.f32 %v1600_v28, %v1597_v27  ;;  %v3246_v28 = vld [vmem:[%s3314_s8] ss:$0 sm:$0xff] }
0x1d67   :  { %v1604_v33 = vadd.f32 %v1603_v0, %v1602_v32 }
0x1d69   :  { %1606 = vrot.lane.b32.xlu1 %v1604_v33, %s2799_s3 }
0x1ddb   :  { %v1607_v34 = vpop.permute.xlu1 %1606 }
0x1ddc   :  { %1609 = vst.msk [vmem:[#allocation2 + $0x18] sm:$0xff] %vm193_vm3, %v1607_v34  ;;  %2525 = vmatmul.mubr.msk.f32.vlgmr.msra.gmra.mrb[20].mxu0 %vm193_vm3, %v1607_v34 }
0x1ddd   :  { %2674 = vmatpush3.bf16.msra.mxu0 %v3075_v25  ;;  %2546 = vmatprep.mubr.msk.f32.mxu0 %vm2796_vm2, %v2797_v19 }
0x1dde   :  { %2675 = vmatprep.subr.bf16.mxu0 %v2795_v10 }
0x1de1   :  { %2677 = vmatpush3.bf16.msra.mxu0 %v3085_v29 }
0x1de2   :  { %2685 = vmatprep.subr.bf16.mxu0 %v2684_v61 }
0x1de3   :  { %v2029_v16 = vld [vmem:[#allocation2 + $0x18] sm:$0xff] }
0x1eaf   :  { %v1678_v7 = vpop.f32.mrb[20].mxu0 }
0x1eb0   :  { %v1689_v35 = vadd.f32 %v1678_v7, %v3116_v40  ;;  %v2526_v36 = vpop.f32.mrb[21].mxu0  ;;  %v1682_v38 = vadd.f32 %v1678_v7, %v1174_v37 }
0x1eb2   :  { %1691 = vrot.lane.b32.xlu0 %v1689_v35, %s2798_s2  ;;  %v2221_v17 = vmul.f32 -1.442695, %v1682_v38 }
0x1eb4   :  { %2771 = vpow2.f32 %v2221_v17 }
0x1ebe   :  { %v2772_v15 = vpop.eup %2771 }
0x1ebf   :  { %v1686_v39 = vadd.f32 1.0, %v2772_v15 }
0x1ec1   :  { %2773 = vrcp.f32 %v1686_v39 }
0x1ecb   :  { %v2774_v20 = vpop.eup %2773 }
0x1ecc   :  { %v1701_v48 = vsub.f32 1.0, %v2774_v20  ;;  %v1707_v3 = vmul.f32 %v2774_v20, %v1604_v33 }
0x1f24   :  { %v1692_v42 = vpop.permute.xlu0 %1691 }
0x1f25   :  { %v1694_v44 = vmul.f32 %v2774_v20, %v1692_v42  ;;  %v1184_v20 = vadd.f32 %v3157_v62, %v3122_v43 }
0x1f27   :  { %1696 = vrot.lane.b32.xlu1 %v1694_v44, %s2798_s2 }
0x1f99   :  { %v1697_v45 = vpop.permute.xlu1 %1696 }
0x1f9a   :  { %v1699_v46 = vadd.f32 %v1697_v45, %v1174_v37 }
0x1f9c   :  { %2775 = vtanh.f32 %v1699_v46 }
0x1fa6   :  { %v2776_v47 = vpop.eup %2775 }
0x1fa7   :  { %1703 = vrot.lane.b32.xlu0 %v2776_v47, %s2799_s3 }
0x2019   :  { %v1704_v49 = vpop.permute.xlu0 %1703 }
0x201a   :  { %v1706_v50 = vmul.f32 %v1704_v49, %v1701_v48 }
0x201c   :  { %v1708_v51 = vadd.f32 %v1707_v3, %v1706_v50 }
0x201e   :  { %1710 = vrot.lane.b32.xlu1 %v1708_v51, %s2799_s3 }
0x2090   :  { %v1711_v52 = vpop.permute.xlu1 %1710 }
0x2091   :  { %1713 = vst.msk [vmem:[#allocation2 + $0x20] sm:$0xff] %vm193_vm3, %v1711_v52  ;;  %2536 = vmatmul.mubr.msk.f32.vlgmr.msra.gmra.mrb[20].mxu1 %vm193_vm3, %v1711_v52 }
0x2092   :  { %2680 = vmatpush3.bf16.msra.mxu1 %v3075_v25  ;;  %2557 = vmatprep.mubr.msk.f32.mxu1 %vm2796_vm2, %v2797_v19 }
0x2093   :  { %2681 = vmatprep.subr.bf16.mxu1 %v2795_v10 }
0x2096   :  { %2683 = vmatpush3.bf16.msra.mxu1 %v3085_v29 }
0x2098   :  { %v2030_v18 = vld [vmem:[#allocation2 + $0x20] sm:$0xff] }
0x2164   :  { %v1782_v53 = vpop.f32.mrb[20].mxu1 }
0x2165   :  { %v1793_v9 = vadd.f32 %v1782_v53, %v3116_v40  ;;  %v2537_v30 = vpop.f32.mrb[21].mxu1  ;;  %v1786_v55 = vadd.f32 %v1782_v53, %v1179_v54 }
0x2167   :  { %1795 = vrot.lane.b32.xlu0 %v1793_v9, %s2798_s2  ;;  %v2223_v56 = vmul.f32 -1.442695, %v1786_v55 }
0x2169   :  { %2777 = vpow2.f32 %v2223_v56 }
0x2173   :  { %v2778_v25 = vpop.eup %2777 }
0x2174   :  { %v1790_v57 = vadd.f32 1.0, %v2778_v25 }
0x2176   :  { %2779 = vrcp.f32 %v1790_v57 }
0x2180   :  { %v2780_v19 = vpop.eup %2779 }
0x2181   :  { %v1805_v63 = vsub.f32 1.0, %v2780_v19  ;;  %v1811_v5 = vmul.f32 %v2780_v19, %v1708_v51 }
0x21d9   :  { %v1796_v58 = vpop.permute.xlu0 %1795 }
0x21da   :  { %v1798_v10 = vmul.f32 %v2780_v19, %v1796_v58  ;;  %v1189_v19 = vadd.f32 %v3155_v41, %v3122_v43 }
0x21dc   :  { %1800 = vrot.lane.b32.xlu1 %v1798_v10, %s2798_s2 }
0x224e   :  { %v1801_v29 = vpop.permute.xlu1 %1800 }
0x224f   :  { %v1803_v59 = vadd.f32 %v1801_v29, %v1179_v54 }
0x2251   :  { %2781 = vtanh.f32 %v1803_v59 }
0x225b   :  { %v2782_v1 = vpop.eup %2781 }
0x225c   :  { %1807 = vrot.lane.b32.xlu0 %v2782_v1, %s2799_s3 }
0x22ce   :  { %v1808_v4 = vpop.permute.xlu0 %1807 }
0x22cf   :  { %v1810_v6 = vmul.f32 %v1808_v4, %v1805_v63 }
0x22d1   :  { %v3223_v8 = vadd.f32 %v1811_v5, %v1810_v6 }
0x22d3   :  { %1814 = vrot.lane.b32.xlu1 %v3223_v8, %s2799_s3 }
0x2345   :  { %v1815_v11 = vpop.permute.xlu1 %1814 }
0x2346   :  { %1817 = vst.msk [vmem:[#allocation2 + $0x28] sm:$0xff] %vm193_vm3, %v1815_v11  ;;  %2547 = vmatmul.mubr.msk.f32.vlgmr.msra.gmra.mrb[22].mxu0 %vm193_vm3, %v1815_v11 }
0x2347   :  { %2687 = vmatpush3.bf16.msra.mxu0 %v2684_v61  ;;  %2568 = vmatprep.mubr.msk.f32.mxu0 %vm193_vm3, %v2026_v12 }
0x2348   :  { %2689 = vmatprep.subr.bf16.mxu0 %v2688_v31 }
0x234b   :  { %2691 = vmatpush3.bf16.msra.mxu0 %v2688_v31 }
0x234d   :  { %v2031_v21 = vld [vmem:[#allocation2 + $0x28] sm:$0xff] }
0x234e   :  { %2569 = vmatmul.mubr.msk.f32.vlgmr.msra.gmra.mrb[24].mxu0 %vm193_vm3, %v2027_v13 }
0x234f   :  { %2571 = vmatprep.mubr.msk.f32.mxu0 %vm193_vm3, %v2028_v14 }
0x2352   :  { %2572 = vmatmul.mubr.msk.f32.gmra.mrb[26].mxu0 %vm193_vm3, %v2029_v16 }
0x2353   :  { %2574 = vmatprep.mubr.msk.f32.mxu0 %vm193_vm3, %v2030_v18 }
0x2356   :  { %2575 = vmatmul.mubr.msk.f32.gmra.mrb[28].mxu0 %vm193_vm3, %v2031_v21 }
0x2419   :  { %v1886_v24 = vpop.f32.mrb[22].mxu0 }
0x241a   :  { %v1897_v23 = vadd.f32 %v1886_v24, %v3116_v40  ;;  %v2548_v27 = vpop.f32.mrb[23].mxu0  ;;  %v1890_v42 = vadd.f32 %v1886_v24, %v1184_v20 }
0x241c   :  { %1899 = vrot.lane.b32.xlu0 %v1897_v23, %s2798_s2  ;;  %v2225_v44 = vmul.f32 -1.442695, %v1890_v42 }
0x241e   :  { %2783 = vpow2.f32 %v2225_v44 }
0x2421   :  { %v2570_v0 = vpop.f32.mrb[24].mxu0 }
0x2422   :  { %v2136_v32 = vadd.f32 %v2570_v0, %v3246_v28  ;;  %v2130_v33 = vpop.f32.mrb[25].mxu0 }
0x2423   :  { %v2131_v34 = vadd.f32 %v3246_v28, %v2130_v33 }
0x2424   :  { %2170 = vst.msk [vmem:[%s3315_s9 + $0x8] sm:$0xff] %vm59_vm1, %v2136_v32 }
0x2425   :  { %2169 = vst.msk [vmem:[%s3315_s9] sm:$0xff] %vm59_vm1, %v2131_v34  ;;  %v2573_v7 = vpop.f32.mrb[26].mxu0 }
0x2426   :  { %v2146_v35 = vadd.f32 %v2573_v7, %v3246_v28  ;;  %v2140_v36 = vpop.f32.mrb[27].mxu0 }
0x2427   :  { %v2141_v37 = vadd.f32 %v3246_v28, %v2140_v36 }
0x2428   :  { %2172 = vst.msk [vmem:[%s3315_s9 + $0x18] sm:$0xff] %vm59_vm1, %v2146_v35  ;;  %v2784_v45 = vpop.eup %2783 }
0x2429   :  { %2171 = vst.msk [vmem:[%s3315_s9 + $0x10] sm:$0xff] %vm59_vm1, %v2141_v37  ;;  %v2576_v38 = vpop.f32.mrb[28].mxu0  ;;  %v1894_v46 = vadd.f32 1.0, %v2784_v45 }
0x242a   :  { %v2156_v17 = vadd.f32 %v2576_v38, %v3246_v28  ;;  %v2150_v15 = vpop.f32.mrb[29].mxu0 }
0x242b   :  { %v2151_v39 = vadd.f32 %v3246_v28, %v2150_v15  ;;  %2785 = vrcp.f32 %v1894_v46 }
0x242c   :  { %2174 = vst.msk [vmem:[%s3315_s9 + $0x28] sm:$0xff] %vm59_vm1, %v2156_v17 }
0x242d   :  { %2173 = vst.msk [vmem:[%s3315_s9 + $0x20] sm:$0xff] %vm59_vm1, %v2151_v39 }
0x2435   :  { %v2786_v47 = vpop.eup %2785 }
0x2436   :  { %v1909_v52 = vsub.f32 1.0, %v2786_v47  ;;  %v1915_v62 = vmul.f32 %v2786_v47, %v3223_v8 }
0x248e   :  { %v1900_v48 = vpop.permute.xlu0 %1899 }
0x248f   :  { %v1902_v49 = vmul.f32 %v2786_v47, %v1900_v48 }
0x2491   :  { %1904 = vrot.lane.b32.xlu1 %v1902_v49, %s2798_s2 }
0x2503   :  { %v1905_v3 = vpop.permute.xlu1 %1904 }
0x2504   :  { %v1907_v50 = vadd.f32 %v1905_v3, %v1184_v20 }
0x2506   :  { %2787 = vtanh.f32 %v1907_v50 }
0x2510   :  { %v2788_v51 = vpop.eup %2787 }
0x2511   :  { %1911 = vrot.lane.b32.xlu0 %v2788_v51, %s2799_s3 }
0x2583   :  { %v1912_v53 = vpop.permute.xlu0 %1911 }
0x2584   :  { %v1914_v9 = vmul.f32 %v1912_v53, %v1909_v52 }
0x2586   :  { %v1916_v30 = vadd.f32 %v1915_v62, %v1914_v9 }
0x2588   :  { %1918 = vrot.lane.b32.xlu1 %v1916_v30, %s2799_s3 }
0x25fa   :  { %v1919_v54 = vpop.permute.xlu1 %1918 }
0x25fb   :  { %1921 = vst.msk [vmem:[#allocation2 + $0x30] sm:$0xff] %vm193_vm3, %v1919_v54  ;;  %2558 = vmatmul.mubr.msk.f32.vlgmr.msra.gmra.mrb[22].mxu1 %vm193_vm3, %v1919_v54 }
0x2602   :  { %v2032_v55 = vld [vmem:[#allocation2 + $0x30] sm:$0xff] }
0x2603   :  { %2577 = vmatprep.mubr.msk.f32.mxu0 %vm193_vm3, %v2032_v55 }
0x26ce   :  { %v1990_v56 = vpop.f32.mrb[22].mxu1 }
0x26cf   :  { %v2001_v25 = vadd.f32 %v1990_v56, %v3116_v40  ;;  %v2559_v57 = vpop.f32.mrb[23].mxu1  ;;  %v1994_v58 = vadd.f32 %v1990_v56, %v1189_v19 }
0x26d1   :  { %2003 = vrot.lane.b32.xlu0 %v2001_v25, %s2798_s2  ;;  %v2227_v10 = vmul.f32 -1.442695, %v1994_v58 }
0x26d3   :  { %2789 = vpow2.f32 %v2227_v10 }
0x26dd   :  { %v2790_v29 = vpop.eup %2789 }
0x26de   :  { %v1998_v59 = vadd.f32 1.0, %v2790_v29 }
0x26e0   :  { %2791 = vrcp.f32 %v1998_v59 }
0x26ea   :  { %v2792_v60 = vpop.eup %2791 }
0x26eb   :  { %v2013_v4 = vsub.f32 1.0, %v2792_v60  ;;  %v2019_v43 = vmul.f32 %v2792_v60, %v1916_v30 }
0x2743   :  { %v2004_v2 = vpop.permute.xlu0 %2003 }
0x2744   :  { %v2006_v61 = vmul.f32 %v2792_v60, %v2004_v2 }
0x2746   :  { %2008 = vrot.lane.b32.xlu1 %v2006_v61, %s2798_s2 }
0x27b8   :  { %v2009_v1 = vpop.permute.xlu1 %2008 }
0x27b9   :  { %v2011_v63 = vadd.f32 %v2009_v1, %v1189_v19 }
0x27bb   :  { %2793 = vtanh.f32 %v2011_v63 }
0x27c5   :  { %v2794_v40 = vpop.eup %2793 }
0x27c6   :  { %2015 = vrot.lane.b32.xlu0 %v2794_v40, %s2799_s3 }
0x2838   :  { %v2016_v5 = vpop.permute.xlu0 %2015 }
0x2839   :  { %v2018_v41 = vmul.f32 %v2016_v5, %v2013_v4 }
0x283b   :  { %v2020_v6 = vadd.f32 %v2019_v43, %v2018_v41 }
0x283d   :  { %2022 = vrot.lane.b32.xlu1 %v2020_v6, %s2799_s3 }
0x28af   :  { %v2023_v8 = vpop.permute.xlu1 %2022 }
0x28b0   :  { %2025 = vst.msk [vmem:[#allocation2 + $0x38] sm:$0xff] %vm193_vm3, %v2023_v8 }
0x28b7   :  { %v2033_v26 = vld [vmem:[#allocation2 + $0x38] sm:$0xff] }
0x28b8   :  { %2578 = vmatmul.mubr.msk.f32.gmra.mrb[30].mxu0 %vm193_vm3, %v2033_v26 }
0x298b   :  { %v2579_v22 = vpop.f32.mrb[30].mxu0 }
0x298c   :  { %v2166_v31 = vadd.f32 %v2579_v22, %v3246_v28  ;;  %v2160_v11 = vpop.f32.mrb[31].mxu0 }
0x298d   :  { %v2161_v12 = vadd.f32 %v3246_v28, %v2160_v11 }
0x298e   :  { %2176 = vst.msk [vmem:[%s3315_s9 + $0x38] sm:$0xff] %vm59_vm1, %v2166_v31 }
0x298f   :  { %2175 = vst.msk [vmem:[%s3315_s9 + $0x30] sm:$0xff] %vm59_vm1, %v2161_v12 }

</bundles_post_ra>
